<compile_context>
chip_gen: v7x
topology: tpu7x:2x2x1
jax: 0.10.0
libtpu: 0.0.40
codegen_flags: <defaults>
</compile_context>

<pallas_src>
import functools

import jax
import jax.numpy as jnp
import numpy as np
from jax import lax
from jax.experimental import pallas as pl
from jax.experimental.pallas import tpu as pltpu

KERNEL_SIZE = 5
PAD = KERNEL_SIZE // 2
BN_EPS = 1e-5


def _round_up(x, m):
    return ((x + m - 1) // m) * m


# ----------------------------- Pallas kernel ---------------------------------
def _classifier_kernel(num_blocks, bt, seq_len, front,
                       x_ref,
                       wi_ref, bi_ref, si_ref, ti_ref,
                       w1_ref, b1_ref, s1_ref, t1_ref,
                       w2_ref, b2_ref, s2_ref, t2_ref,
                       wf_ref, bf_ref,
                       o_ref,
                       hp_ref):
    L = seq_len
    M = bt * L
    H = hp_ref.shape[-1]

    # Zero the padded hidden scratch once per grid step; only rows [front, front+L)
    # are ever overwritten below, so the halo rows stay zero for every conv.
    hp_ref[...] = jnp.zeros_like(hp_ref)

    def conv(src_ref, tap_weights, bias):
        """PyTorch-equivalent 'same' Conv1d on a zero-padded (bt, lp, Cin) ref.

        K static shifted-window reads + K (M, Cin) x (Cin, Cout) MXU matmuls.
        """
        acc = None
        for k in range(KERNEL_SIZE):
            start = front + k - PAD                           # static offset
            win = src_ref[:, start:start + L, :]              # (bt, L, Cin), zero halo
            xs = win.reshape(M, win.shape[-1])                # L % 8 == 0 -> trivial
            t = jnp.dot(xs, tap_weights[k], preferred_element_type=jnp.float32)
            acc = t if acc is None else acc + t
        return acc + bias                                     # (M, Cout)

    # initial_conv -> initial_bn -> relu (windows read straight from the padded input)
    h = conv(x_ref, [wi_ref[k] for k in range(KERNEL_SIZE)], bi_ref[...])
    h = jnp.maximum(h * si_ref[...] + ti_ref[...], 0.0)       # (M, H)

    # Residual blocks (in_channels == out_channels -> identity shortcut).
    # NOTE: unrolled Python loop is the right call for small num_blocks; switch to
    # lax.fori_loop with dynamic w1_ref[blk] indexing for large block counts.
    for blk in range(num_blocks):
        identity = h
        hp_ref[:, front:front + L, :] = h.reshape(bt, L, H)   # aligned store
        out = conv(hp_ref, [w1_ref[blk, k] for k in range(KERNEL_SIZE)], b1_ref[blk])
        out = jnp.maximum(out * s1_ref[blk] + t1_ref[blk], 0.0)
        # TODO(synk): Dropout is identity in eval mode; training-mode dropout not implemented.
        hp_ref[:, front:front + L, :] = out.reshape(bt, L, H)
        out = conv(hp_ref, [w2_ref[blk, k] for k in range(KERNEL_SIZE)], b2_ref[blk])
        out = out * s2_ref[blk] + t2_ref[blk] + identity
        h = jnp.maximum(out, 0.0)

    # AdaptiveAvgPool1d(1) + Linear + Sigmoid.  The pool's 1/L is folded into wf in the
    # wrapper, so run the matmul at full M first and reduce the small (bt, L, O) result.
    logits_rows = jnp.dot(h, wf_ref[...], preferred_element_type=jnp.float32)  # (M, O)
    logits = jnp.sum(logits_rows.reshape(bt, L, -1), axis=1) + bf_ref[...]     # (bt, O)
    o_ref[...] = jax.nn.sigmoid(logits).reshape(bt, 1, -1).astype(o_ref.dtype)


def _choose_batch_tile(B, L, max_rows=512):
    """Batch elements per grid step: whole batch at small sizes; otherwise the largest
    divisor of B that keeps BT*L modest and the output block tile-friendly."""
    if B * L <= max_rows:
        return B
    for cand in range(B - 1, 0, -1):
        if B % cand == 0 and cand * L <= max_rows and cand % 8 == 0:
            return cand
    return B


def residual_classifier_forward(x_ncl, params, num_blocks):
    """x_ncl: (B, input_dim, L) like the PyTorch module.  Returns (B, output_dim)."""
    (wi, bi, si, ti, w1, b1, s1, t1, w2, b2, s2, t2, wf, bf) = params
    B, Cin, L = x_ncl.shape
    K, _, H = wi.shape
    assert K == KERNEL_SIZE
    O = wf.shape[1]

    front = _round_up(max(PAD, 8), 8)              # sublane-aligned halo before the seq
    lp = front + _round_up(L + PAD, 8)             # padded sequence length
    bt = _choose_batch_tile(B, L)
    grid = (B // bt,)

    # Channels-last + zero halo along L (provides 'same' padding for the initial conv).
    x = jnp.transpose(x_ncl, (0, 2, 1)).astype(jnp.float32)        # (B, L, Cin)
    x = jnp.pad(x, ((0, 0), (front, lp - front - L), (0, 0)))      # (B, lp, Cin)

    # Fold AdaptiveAvgPool1d's 1/L into the classifier weight (pool + fc fusion).
    wf_scaled = (wf / jnp.float32(L)).astype(jnp.float32)

    kparams = (wi, bi, si, ti, w1, b1, s1, t1, w2, b2, s2, t2, wf_scaled, bf)

    def full_spec(p):
        return pl.BlockSpec(p.shape, lambda b, _nd=p.ndim: (0,) * _nd)

    in_specs = [pl.BlockSpec((bt, lp, Cin), lambda b: (b, 0, 0))] + \
               [full_spec(p) for p in kparams]
    out_spec = pl.BlockSpec((bt, 1, O), lambda b: (b, 0, 0))

    kernel = functools.partial(_classifier_kernel, num_blocks, bt, L, front)
    out = pl.pallas_call(
        kernel,
        out_shape=jax.ShapeDtypeStruct((B, 1, O), jnp.float32),
        grid_spec=pltpu.PrefetchScalarGridSpec(
            num_scalar_prefetch=0,
            grid=grid,
            in_specs=in_specs,
            out_specs=out_spec,
            scratch_shapes=[pltpu.VMEM((bt, lp, H), jnp.float32)],  # padded hidden acts
        ),
        compiler_params=pltpu.CompilerParams(
            dimension_semantics=("parallel",),     # batch steps are independent
            vmem_limit_bytes=32 * 1024 * 1024,
        ),
    )(x, *kparams)
    return out[:, 0, :]                                             # (B, O)


# -------------------------- parameter initialization -------------------------
def init_params(key, input_dim, output_dim, hidden_dim, num_blocks, kernel_size):
    keys = iter(jax.random.split(key, 64))

    def nrm(shape, s=0.1):
        return jax.random.normal(next(keys), shape, jnp.float32) * s

    def pos(shape):
        return jax.random.uniform(next(keys), shape, jnp.float32, minval=0.5, maxval=1.5)

    def bn_fold(gamma, beta, mean, var):
        scale = gamma / jnp.sqrt(var + BN_EPS)
        shift = beta - mean * scale
        return scale[..., None, :], shift[..., None, :]

    H, NB, K = hidden_dim, num_blocks, kernel_size

    wi = nrm((K, input_dim, H))
    bi = nrm((1, H))
    si, ti = bn_fold(pos((H,)), nrm((H,)), nrm((H,)), pos((H,)))

    w1 = nrm((NB, K, H, H))
    b1 = nrm((NB, 1, H))
    s1, t1 = bn_fold(pos((NB, H)), nrm((NB, H)), nrm((NB, H)), pos((NB, H)))

    w2 = nrm((NB, K, H, H))
    b2 = nrm((NB, 1, H))
    s2, t2 = bn_fold(pos((NB, H)), nrm((NB, H)), nrm((NB, H)), pos((NB, H)))

    wf = nrm((H, output_dim))
    bf = nrm((1, output_dim))

    return (wi, bi, si, ti, w1, b1, s1, t1, w2, b2, s2, t2, wf, bf)


# --------------------------- pure-JAX reference -------------------------------
def reference_forward(x_ncl, params, num_blocks):
    wi, bi, si, ti, w1, b1, s1, t1, w2, b2, s2, t2, wf, bf = params
    x = jnp.transpose(x_ncl, (0, 2, 1)).astype(jnp.float32)   # (B, L, Cin)

    def conv(h, w, b):
        B, L, _ = h.shape
        hp = jnp.pad(h, ((0, 0), (PAD, PAD), (0, 0)))
        out = jnp.zeros((B, L, w.shape[2]), jnp.float32)
        for k in range(KERNEL_SIZE):
            out = out + jnp.einsum('blc,cd->bld', hp[:, k:k + L, :], w[k],
                                   precision=lax.Precision.HIGHEST)
        return out + b

    h = jnp.maximum(conv(x, wi, bi) * si + ti, 0.0)
    for blk in range(num_blocks):
        idn = h
        o = jnp.maximum(conv(h, w1[blk], b1[blk]) * s1[blk] + t1[blk], 0.0)
        o = conv(o, w2[blk], b2[blk]) * s2[blk] + t2[blk] + idn
        h = jnp.maximum(o, 0.0)
    pooled = jnp.mean(h, axis=1)                              # (B, H)
    return jax.nn.sigmoid(pooled @ wf + bf)


# ------------------------------------ main ------------------------------------
if __name__ == "__main__":
    B, INPUT_DIM, SEQ_LEN = 2, 4, 16
    HIDDEN_DIM, OUTPUT_DIM, NUM_BLOCKS = 32, 3, 3

    root = jax.random.PRNGKey(0)
    k_x, k_p = jax.random.split(root)

    x = jax.random.normal(k_x, (B, INPUT_DIM, SEQ_LEN), jnp.float32)  # NCL like PyTorch
    params = init_params(k_p, INPUT_DIM, OUTPUT_DIM, HIDDEN_DIM, NUM_BLOCKS, KERNEL_SIZE)

    out = residual_classifier_forward(x, params, NUM_BLOCKS)
    out = jax.block_until_ready(out)

    ref = jax.block_until_ready(reference_forward(x, params, NUM_BLOCKS))

    assert out.shape == (B, OUTPUT_DIM), out.shape
    np.testing.assert_allclose(np.asarray(out), np.asarray(ref), rtol=5e-3, atol=5e-3)

    print("KERNEL_OK")
</pallas_src>

<mosaic_0001>
module attributes {stable_mosaic.version = 11 : i64} {
  func.func @_classifier_kernel(%arg0: i32, %arg1: memref<2x32x4xf32, #tpu.memory_space<vmem>>, %arg2: memref<5x4x32xf32, #tpu.memory_space<vmem>>, %arg3: memref<1x32xf32, #tpu.memory_space<vmem>>, %arg4: memref<1x32xf32, #tpu.memory_space<vmem>>, %arg5: memref<1x32xf32, #tpu.memory_space<vmem>>, %arg6: memref<3x5x32x32xf32, #tpu.memory_space<vmem>>, %arg7: memref<3x1x32xf32, #tpu.memory_space<vmem>>, %arg8: memref<3x1x32xf32, #tpu.memory_space<vmem>>, %arg9: memref<3x1x32xf32, #tpu.memory_space<vmem>>, %arg10: memref<3x5x32x32xf32, #tpu.memory_space<vmem>>, %arg11: memref<3x1x32xf32, #tpu.memory_space<vmem>>, %arg12: memref<3x1x32xf32, #tpu.memory_space<vmem>>, %arg13: memref<3x1x32xf32, #tpu.memory_space<vmem>>, %arg14: memref<32x3xf32, #tpu.memory_space<vmem>>, %arg15: memref<1x3xf32, #tpu.memory_space<vmem>>, %arg16: memref<2x1x3xf32, #tpu.memory_space<vmem>>, %arg17: memref<2x32x32xf32, #tpu.memory_space<vmem>>) attributes {dimension_semantics = [#tpu.dimension_semantics<parallel>], iteration_bounds = array<i64: 1>, scalar_prefetch = 0 : i64, scratch_operands = 1 : i64, tpu.core_type = #tpu.core_type<tc>, window_params = [{transform_indices = @transform_0, window_bounds = array<i64: 2, 32, 4>}, {pipeline_mode = #tpu.pipeline_mode<synchronous>, transform_indices = @transform_1, window_bounds = array<i64: 5, 4, 32>}, {pipeline_mode = #tpu.pipeline_mode<synchronous>, transform_indices = @transform_2, window_bounds = array<i64: 1, 32>}, {pipeline_mode = #tpu.pipeline_mode<synchronous>, transform_indices = @transform_3, window_bounds = array<i64: 1, 32>}, {pipeline_mode = #tpu.pipeline_mode<synchronous>, transform_indices = @transform_4, window_bounds = array<i64: 1, 32>}, {pipeline_mode = #tpu.pipeline_mode<synchronous>, transform_indices = @transform_5, window_bounds = array<i64: 3, 5, 32, 32>}, {pipeline_mode = #tpu.pipeline_mode<synchronous>, transform_indices = @transform_6, window_bounds = array<i64: 3, 1, 32>}, {pipeline_mode = #tpu.pipeline_mode<synchronous>, transform_indices = @transform_7, window_bounds = array<i64: 3, 1, 32>}, {pipeline_mode = #tpu.pipeline_mode<synchronous>, transform_indices = @transform_8, window_bounds = array<i64: 3, 1, 32>}, {pipeline_mode = #tpu.pipeline_mode<synchronous>, transform_indices = @transform_9, window_bounds = array<i64: 3, 5, 32, 32>}, {pipeline_mode = #tpu.pipeline_mode<synchronous>, transform_indices = @transform_10, window_bounds = array<i64: 3, 1, 32>}, {pipeline_mode = #tpu.pipeline_mode<synchronous>, transform_indices = @transform_11, window_bounds = array<i64: 3, 1, 32>}, {pipeline_mode = #tpu.pipeline_mode<synchronous>, transform_indices = @transform_12, window_bounds = array<i64: 3, 1, 32>}, {pipeline_mode = #tpu.pipeline_mode<synchronous>, transform_indices = @transform_13, window_bounds = array<i64: 32, 3>}, {pipeline_mode = #tpu.pipeline_mode<synchronous>, transform_indices = @transform_14, window_bounds = array<i64: 1, 3>}, {transform_indices = @transform_15, window_bounds = array<i64: 2, 1, 3>}]} {
    %cst = arith.constant 0.000000e+00 : f32
    %0 = vector.broadcast %cst : f32 to vector<2x32x32xf32>
    %c0 = arith.constant 0 : index
    %c0_0 = arith.constant 0 : index
    %c0_1 = arith.constant 0 : index
    %1 = vector.load %arg17[%c0, %c0_0, %c0_1] : memref<2x32x32xf32, #tpu.memory_space<vmem>>, vector<2x32x32xf32>
    tpu.vector_store %arg17[%c0, %c0_0, %c0_1], %0 {strides = array<i32>} : memref<2x32x32xf32, #tpu.memory_space<vmem>>, vector<2x32x32xf32>,
    %c0_2 = arith.constant 0 : index
    %c0_3 = arith.constant 0 : index
    %c0_4 = arith.constant 0 : index
    %2 = vector.load %arg2[%c0_2, %c0_3, %c0_4] : memref<5x4x32xf32, #tpu.memory_space<vmem>>, vector<1x4x32xf32>
    %3 = vector.shape_cast %2 : vector<1x4x32xf32> to vector<4x32xf32>
    %c1 = arith.constant 1 : index
    %c0_5 = arith.constant 0 : index
    %c0_6 = arith.constant 0 : index
    %4 = vector.load %arg2[%c1, %c0_5, %c0_6] : memref<5x4x32xf32, #tpu.memory_space<vmem>>, vector<1x4x32xf32>
    %5 = vector.shape_cast %4 : vector<1x4x32xf32> to vector<4x32xf32>
    %c2 = arith.constant 2 : index
    %c0_7 = arith.constant 0 : index
    %c0_8 = arith.constant 0 : index
    %6 = vector.load %arg2[%c2, %c0_7, %c0_8] : memref<5x4x32xf32, #tpu.memory_space<vmem>>, vector<1x4x32xf32>
    %7 = vector.shape_cast %6 : vector<1x4x32xf32> to vector<4x32xf32>
    %c3 = arith.constant 3 : index
    %c0_9 = arith.constant 0 : index
    %c0_10 = arith.constant 0 : index
    %8 = vector.load %arg2[%c3, %c0_9, %c0_10] : memref<5x4x32xf32, #tpu.memory_space<vmem>>, vector<1x4x32xf32>
    %9 = vector.shape_cast %8 : vector<1x4x32xf32> to vector<4x32xf32>
    %c4 = arith.constant 4 : index
    %c0_11 = arith.constant 0 : index
    %c0_12 = arith.constant 0 : index
    %10 = vector.load %arg2[%c4, %c0_11, %c0_12] : memref<5x4x32xf32, #tpu.memory_space<vmem>>, vector<1x4x32xf32>
    %11 = vector.shape_cast %10 : vector<1x4x32xf32> to vector<4x32xf32>
    %c0_13 = arith.constant 0 : index
    %c0_14 = arith.constant 0 : index
    %12 = vector.load %arg3[%c0_13, %c0_14] : memref<1x32xf32, #tpu.memory_space<vmem>>, vector<1x32xf32>
    %c0_15 = arith.constant 0 : index
    %c6 = arith.constant 6 : index
    %c0_16 = arith.constant 0 : index
    %13 = vector.load %arg1[%c0_15, %c6, %c0_16] : memref<2x32x4xf32, #tpu.memory_space<vmem>>, vector<2x16x4xf32>
    %14 = vector.shape_cast %13 : vector<2x16x4xf32> to vector<32x4xf32>
    %cst_17 = arith.constant dense<0.000000e+00> : vector<32x32xf32>
    %15 = tpu.matmul %14, %3, %cst_17 {dimension_numbers = #tpu.dot_dimension_numbers<[1], [0], [0], [1], [0, 0, 1, 1], [], []>} : vector<32x4xf32>, vector<4x32xf32>, vector<32x32xf32> -> vector<32x32xf32>
    %c0_18 = arith.constant 0 : index
    %c7 = arith.constant 7 : index
    %c0_19 = arith.constant 0 : index
    %16 = vector.load %arg1[%c0_18, %c7, %c0_19] : memref<2x32x4xf32, #tpu.memory_space<vmem>>, vector<2x16x4xf32>
    %17 = vector.shape_cast %16 : vector<2x16x4xf32> to vector<32x4xf32>
    %cst_20 = arith.constant dense<0.000000e+00> : vector<32x32xf32>
    %18 = tpu.matmul %17, %5, %cst_20 {dimension_numbers = #tpu.dot_dimension_numbers<[1], [0], [0], [1], [0, 0, 1, 1], [], []>} : vector<32x4xf32>, vector<4x32xf32>, vector<32x32xf32> -> vector<32x32xf32>
    %19 = arith.addf %15, %18 : vector<32x32xf32>
    %c0_21 = arith.constant 0 : index
    %c8 = arith.constant 8 : index
    %c0_22 = arith.constant 0 : index
    %20 = vector.load %arg1[%c0_21, %c8, %c0_22] : memref<2x32x4xf32, #tpu.memory_space<vmem>>, vector<2x16x4xf32>
    %21 = vector.shape_cast %20 : vector<2x16x4xf32> to vector<32x4xf32>
    %cst_23 = arith.constant dense<0.000000e+00> : vector<32x32xf32>
    %22 = tpu.matmul %21, %7, %cst_23 {dimension_numbers = #tpu.dot_dimension_numbers<[1], [0], [0], [1], [0, 0, 1, 1], [], []>} : vector<32x4xf32>, vector<4x32xf32>, vector<32x32xf32> -> vector<32x32xf32>
    %23 = arith.addf %19, %22 : vector<32x32xf32>
    %c0_24 = arith.constant 0 : index
    %c9 = arith.constant 9 : index
    %c0_25 = arith.constant 0 : index
    %24 = vector.load %arg1[%c0_24, %c9, %c0_25] : memref<2x32x4xf32, #tpu.memory_space<vmem>>, vector<2x16x4xf32>
    %25 = vector.shape_cast %24 : vector<2x16x4xf32> to vector<32x4xf32>
    %cst_26 = arith.constant dense<0.000000e+00> : vector<32x32xf32>
    %26 = tpu.matmul %25, %9, %cst_26 {dimension_numbers = #tpu.dot_dimension_numbers<[1], [0], [0], [1], [0, 0, 1, 1], [], []>} : vector<32x4xf32>, vector<4x32xf32>, vector<32x32xf32> -> vector<32x32xf32>
    %27 = arith.addf %23, %26 : vector<32x32xf32>
    %c0_27 = arith.constant 0 : index
    %c10 = arith.constant 10 : index
    %c0_28 = arith.constant 0 : index
    %28 = vector.load %arg1[%c0_27, %c10, %c0_28] : memref<2x32x4xf32, #tpu.memory_space<vmem>>, vector<2x16x4xf32>
    %29 = vector.shape_cast %28 : vector<2x16x4xf32> to vector<32x4xf32>
    %cst_29 = arith.constant dense<0.000000e+00> : vector<32x32xf32>
    %30 = tpu.matmul %29, %11, %cst_29 {dimension_numbers = #tpu.dot_dimension_numbers<[1], [0], [0], [1], [0, 0, 1, 1], [], []>} : vector<32x4xf32>, vector<4x32xf32>, vector<32x32xf32> -> vector<32x32xf32>
    %31 = arith.addf %27, %30 : vector<32x32xf32>
    %32 = vector.broadcast %12 : vector<1x32xf32> to vector<32x32xf32>
    %33 = arith.addf %31, %32 : vector<32x32xf32>
    %c0_30 = arith.constant 0 : index
    %c0_31 = arith.constant 0 : index
    %34 = vector.load %arg4[%c0_30, %c0_31] : memref<1x32xf32, #tpu.memory_space<vmem>>, vector<1x32xf32>
    %35 = vector.broadcast %34 : vector<1x32xf32> to vector<32x32xf32>
    %36 = arith.mulf %33, %35 : vector<32x32xf32>
    %c0_32 = arith.constant 0 : index
    %c0_33 = arith.constant 0 : index
    %37 = vector.load %arg5[%c0_32, %c0_33] : memref<1x32xf32, #tpu.memory_space<vmem>>, vector<1x32xf32>
    %38 = vector.broadcast %37 : vector<1x32xf32> to vector<32x32xf32>
    %39 = arith.addf %36, %38 : vector<32x32xf32>
    %cst_34 = arith.constant 0.000000e+00 : f32
    %40 = vector.broadcast %cst_34 : f32 to vector<32x32xf32>
    %41 = arith.maximumf %39, %40 : vector<32x32xf32>
    %42 = vector.shape_cast %41 : vector<32x32xf32> to vector<2x16x32xf32>
    %c0_35 = arith.constant 0 : index
    %c8_36 = arith.constant 8 : index
    %c0_37 = arith.constant 0 : index
    %43 = vector.load %arg17[%c0_35, %c8_36, %c0_37] : memref<2x32x32xf32, #tpu.memory_space<vmem>>, vector<2x16x32xf32>
    tpu.vector_store %arg17[%c0_35, %c8_36, %c0_37], %42 {strides = array<i32>} : memref<2x32x32xf32, #tpu.memory_space<vmem>>, vector<2x16x32xf32>,
    %c0_38 = arith.constant 0 : index
    %c0_39 = arith.constant 0 : index
    %c0_40 = arith.constant 0 : index
    %c0_41 = arith.constant 0 : index
    %44 = vector.load %arg6[%c0_38, %c0_39, %c0_40, %c0_41] : memref<3x5x32x32xf32, #tpu.memory_space<vmem>>, vector<1x1x32x32xf32>
    %45 = vector.shape_cast %44 : vector<1x1x32x32xf32> to vector<32x32xf32>
    %c0_42 = arith.constant 0 : index
    %c1_43 = arith.constant 1 : index
    %c0_44 = arith.constant 0 : index
    %c0_45 = arith.constant 0 : index
    %46 = vector.load %arg6[%c0_42, %c1_43, %c0_44, %c0_45] : memref<3x5x32x32xf32, #tpu.memory_space<vmem>>, vector<1x1x32x32xf32>
    %47 = vector.shape_cast %46 : vector<1x1x32x32xf32> to vector<32x32xf32>
    %c0_46 = arith.constant 0 : index
    %c2_47 = arith.constant 2 : index
    %c0_48 = arith.constant 0 : index
    %c0_49 = arith.constant 0 : index
    %48 = vector.load %arg6[%c0_46, %c2_47, %c0_48, %c0_49] : memref<3x5x32x32xf32, #tpu.memory_space<vmem>>, vector<1x1x32x32xf32>
    %49 = vector.shape_cast %48 : vector<1x1x32x32xf32> to vector<32x32xf32>
    %c0_50 = arith.constant 0 : index
    %c3_51 = arith.constant 3 : index
    %c0_52 = arith.constant 0 : index
    %c0_53 = arith.constant 0 : index
    %50 = vector.load %arg6[%c0_50, %c3_51, %c0_52, %c0_53] : memref<3x5x32x32xf32, #tpu.memory_space<vmem>>, vector<1x1x32x32xf32>
    %51 = vector.shape_cast %50 : vector<1x1x32x32xf32> to vector<32x32xf32>
    %c0_54 = arith.constant 0 : index
    %c4_55 = arith.constant 4 : index
    %c0_56 = arith.constant 0 : index
    %c0_57 = arith.constant 0 : index
    %52 = vector.load %arg6[%c0_54, %c4_55, %c0_56, %c0_57] : memref<3x5x32x32xf32, #tpu.memory_space<vmem>>, vector<1x1x32x32xf32>
    %53 = vector.shape_cast %52 : vector<1x1x32x32xf32> to vector<32x32xf32>
    %c0_58 = arith.constant 0 : index
    %c0_59 = arith.constant 0 : index
    %c0_60 = arith.constant 0 : index
    %54 = vector.load %arg7[%c0_58, %c0_59, %c0_60] : memref<3x1x32xf32, #tpu.memory_space<vmem>>, vector<1x1x32xf32>
    %55 = vector.shape_cast %54 : vector<1x1x32xf32> to vector<1x32xf32>
    %c0_61 = arith.constant 0 : index
    %c6_62 = arith.constant 6 : index
    %c0_63 = arith.constant 0 : index
    %56 = vector.load %arg17[%c0_61, %c6_62, %c0_63] : memref<2x32x32xf32, #tpu.memory_space<vmem>>, vector<2x16x32xf32>
    %57 = vector.shape_cast %56 : vector<2x16x32xf32> to vector<32x32xf32>
    %cst_64 = arith.constant dense<0.000000e+00> : vector<32x32xf32>
    %58 = tpu.matmul %57, %45, %cst_64 {dimension_numbers = #tpu.dot_dimension_numbers<[1], [0], [0], [1], [0, 0, 1, 1], [], []>} : vector<32x32xf32>, vector<32x32xf32>, vector<32x32xf32> -> vector<32x32xf32>
    %c0_65 = arith.constant 0 : index
    %c7_66 = arith.constant 7 : index
    %c0_67 = arith.constant 0 : index
    %59 = vector.load %arg17[%c0_65, %c7_66, %c0_67] : memref<2x32x32xf32, #tpu.memory_space<vmem>>, vector<2x16x32xf32>
    %60 = vector.shape_cast %59 : vector<2x16x32xf32> to vector<32x32xf32>
    %cst_68 = arith.constant dense<0.000000e+00> : vector<32x32xf32>
    %61 = tpu.matmul %60, %47, %cst_68 {dimension_numbers = #tpu.dot_dimension_numbers<[1], [0], [0], [1], [0, 0, 1, 1], [], []>} : vector<32x32xf32>, vector<32x32xf32>, vector<32x32xf32> -> vector<32x32xf32>
    %62 = arith.addf %58, %61 : vector<32x32xf32>
    %c0_69 = arith.constant 0 : index
    %c8_70 = arith.constant 8 : index
    %c0_71 = arith.constant 0 : index
    %63 = vector.load %arg17[%c0_69, %c8_70, %c0_71] : memref<2x32x32xf32, #tpu.memory_space<vmem>>, vector<2x16x32xf32>
    %64 = vector.shape_cast %63 : vector<2x16x32xf32> to vector<32x32xf32>
    %cst_72 = arith.constant dense<0.000000e+00> : vector<32x32xf32>
    %65 = tpu.matmul %64, %49, %cst_72 {dimension_numbers = #tpu.dot_dimension_numbers<[1], [0], [0], [1], [0, 0, 1, 1], [], []>} : vector<32x32xf32>, vector<32x32xf32>, vector<32x32xf32> -> vector<32x32xf32>
    %66 = arith.addf %62, %65 : vector<32x32xf32>
    %c0_73 = arith.constant 0 : index
    %c9_74 = arith.constant 9 : index
    %c0_75 = arith.constant 0 : index
    %67 = vector.load %arg17[%c0_73, %c9_74, %c0_75] : memref<2x32x32xf32, #tpu.memory_space<vmem>>, vector<2x16x32xf32>
    %68 = vector.shape_cast %67 : vector<2x16x32xf32> to vector<32x32xf32>
    %cst_76 = arith.constant dense<0.000000e+00> : vector<32x32xf32>
    %69 = tpu.matmul %68, %51, %cst_76 {dimension_numbers = #tpu.dot_dimension_numbers<[1], [0], [0], [1], [0, 0, 1, 1], [], []>} : vector<32x32xf32>, vector<32x32xf32>, vector<32x32xf32> -> vector<32x32xf32>
    %70 = arith.addf %66, %69 : vector<32x32xf32>
    %c0_77 = arith.constant 0 : index
    %c10_78 = arith.constant 10 : index
    %c0_79 = arith.constant 0 : index
    %71 = vector.load %arg17[%c0_77, %c10_78, %c0_79] : memref<2x32x32xf32, #tpu.memory_space<vmem>>, vector<2x16x32xf32>
    %72 = vector.shape_cast %71 : vector<2x16x32xf32> to vector<32x32xf32>
    %cst_80 = arith.constant dense<0.000000e+00> : vector<32x32xf32>
    %73 = tpu.matmul %72, %53, %cst_80 {dimension_numbers = #tpu.dot_dimension_numbers<[1], [0], [0], [1], [0, 0, 1, 1], [], []>} : vector<32x32xf32>, vector<32x32xf32>, vector<32x32xf32> -> vector<32x32xf32>
    %74 = arith.addf %70, %73 : vector<32x32xf32>
    %75 = vector.broadcast %55 : vector<1x32xf32> to vector<32x32xf32>
    %76 = arith.addf %74, %75 : vector<32x32xf32>
    %c0_81 = arith.constant 0 : index
    %c0_82 = arith.constant 0 : index
    %c0_83 = arith.constant 0 : index
    %77 = vector.load %arg8[%c0_81, %c0_82, %c0_83] : memref<3x1x32xf32, #tpu.memory_space<vmem>>, vector<1x1x32xf32>
    %78 = vector.shape_cast %77 : vector<1x1x32xf32> to vector<1x32xf32>
    %79 = vector.broadcast %78 : vector<1x32xf32> to vector<32x32xf32>
    %80 = arith.mulf %76, %79 : vector<32x32xf32>
    %c0_84 = arith.constant 0 : index
    %c0_85 = arith.constant 0 : index
    %c0_86 = arith.constant 0 : index
    %81 = vector.load %arg9[%c0_84, %c0_85, %c0_86] : memref<3x1x32xf32, #tpu.memory_space<vmem>>, vector<1x1x32xf32>
    %82 = vector.shape_cast %81 : vector<1x1x32xf32> to vector<1x32xf32>
    %83 = vector.broadcast %82 : vector<1x32xf32> to vector<32x32xf32>
    %84 = arith.addf %80, %83 : vector<32x32xf32>
    %cst_87 = arith.constant 0.000000e+00 : f32
    %85 = vector.broadcast %cst_87 : f32 to vector<32x32xf32>
    %86 = arith.maximumf %84, %85 : vector<32x32xf32>
    %87 = vector.shape_cast %86 : vector<32x32xf32> to vector<2x16x32xf32>
    %c0_88 = arith.constant 0 : index
    %c8_89 = arith.constant 8 : index
    %c0_90 = arith.constant 0 : index
    %88 = vector.load %arg17[%c0_88, %c8_89, %c0_90] : memref<2x32x32xf32, #tpu.memory_space<vmem>>, vector<2x16x32xf32>
    tpu.vector_store %arg17[%c0_88, %c8_89, %c0_90], %87 {strides = array<i32>} : memref<2x32x32xf32, #tpu.memory_space<vmem>>, vector<2x16x32xf32>,
    %c0_91 = arith.constant 0 : index
    %c0_92 = arith.constant 0 : index
    %c0_93 = arith.constant 0 : index
    %c0_94 = arith.constant 0 : index
    %89 = vector.load %arg10[%c0_91, %c0_92, %c0_93, %c0_94] : memref<3x5x32x32xf32, #tpu.memory_space<vmem>>, vector<1x1x32x32xf32>
    %90 = vector.shape_cast %89 : vector<1x1x32x32xf32> to vector<32x32xf32>
    %c0_95 = arith.constant 0 : index
    %c1_96 = arith.constant 1 : index
    %c0_97 = arith.constant 0 : index
    %c0_98 = arith.constant 0 : index
    %91 = vector.load %arg10[%c0_95, %c1_96, %c0_97, %c0_98] : memref<3x5x32x32xf32, #tpu.memory_space<vmem>>, vector<1x1x32x32xf32>
    %92 = vector.shape_cast %91 : vector<1x1x32x32xf32> to vector<32x32xf32>
    %c0_99 = arith.constant 0 : index
    %c2_100 = arith.constant 2 : index
    %c0_101 = arith.constant 0 : index
    %c0_102 = arith.constant 0 : index
    %93 = vector.load %arg10[%c0_99, %c2_100, %c0_101, %c0_102] : memref<3x5x32x32xf32, #tpu.memory_space<vmem>>, vector<1x1x32x32xf32>
    %94 = vector.shape_cast %93 : vector<1x1x32x32xf32> to vector<32x32xf32>
    %c0_103 = arith.constant 0 : index
    %c3_104 = arith.constant 3 : index
    %c0_105 = arith.constant 0 : index
    %c0_106 = arith.constant 0 : index
    %95 = vector.load %arg10[%c0_103, %c3_104, %c0_105, %c0_106] : memref<3x5x32x32xf32, #tpu.memory_space<vmem>>, vector<1x1x32x32xf32>
    %96 = vector.shape_cast %95 : vector<1x1x32x32xf32> to vector<32x32xf32>
    %c0_107 = arith.constant 0 : index
    %c4_108 = arith.constant 4 : index
    %c0_109 = arith.constant 0 : index
    %c0_110 = arith.constant 0 : index
    %97 = vector.load %arg10[%c0_107, %c4_108, %c0_109, %c0_110] : memref<3x5x32x32xf32, #tpu.memory_space<vmem>>, vector<1x1x32x32xf32>
    %98 = vector.shape_cast %97 : vector<1x1x32x32xf32> to vector<32x32xf32>
    %c0_111 = arith.constant 0 : index
    %c0_112 = arith.constant 0 : index
    %c0_113 = arith.constant 0 : index
    %99 = vector.load %arg11[%c0_111, %c0_112, %c0_113] : memref<3x1x32xf32, #tpu.memory_space<vmem>>, vector<1x1x32xf32>
    %100 = vector.shape_cast %99 : vector<1x1x32xf32> to vector<1x32xf32>
    %c0_114 = arith.constant 0 : index
    %c6_115 = arith.constant 6 : index
    %c0_116 = arith.constant 0 : index
    %101 = vector.load %arg17[%c0_114, %c6_115, %c0_116] : memref<2x32x32xf32, #tpu.memory_space<vmem>>, vector<2x16x32xf32>
    %102 = vector.shape_cast %101 : vector<2x16x32xf32> to vector<32x32xf32>
    %cst_117 = arith.constant dense<0.000000e+00> : vector<32x32xf32>
    %103 = tpu.matmul %102, %90, %cst_117 {dimension_numbers = #tpu.dot_dimension_numbers<[1], [0], [0], [1], [0, 0, 1, 1], [], []>} : vector<32x32xf32>, vector<32x32xf32>, vector<32x32xf32> -> vector<32x32xf32>
    %c0_118 = arith.constant 0 : index
    %c7_119 = arith.constant 7 : index
    %c0_120 = arith.constant 0 : index
    %104 = vector.load %arg17[%c0_118, %c7_119, %c0_120] : memref<2x32x32xf32, #tpu.memory_space<vmem>>, vector<2x16x32xf32>
    %105 = vector.shape_cast %104 : vector<2x16x32xf32> to vector<32x32xf32>
    %cst_121 = arith.constant dense<0.000000e+00> : vector<32x32xf32>
    %106 = tpu.matmul %105, %92, %cst_121 {dimension_numbers = #tpu.dot_dimension_numbers<[1], [0], [0], [1], [0, 0, 1, 1], [], []>} : vector<32x32xf32>, vector<32x32xf32>, vector<32x32xf32> -> vector<32x32xf32>
    %107 = arith.addf %103, %106 : vector<32x32xf32>
    %c0_122 = arith.constant 0 : index
    %c8_123 = arith.constant 8 : index
    %c0_124 = arith.constant 0 : index
    %108 = vector.load %arg17[%c0_122, %c8_123, %c0_124] : memref<2x32x32xf32, #tpu.memory_space<vmem>>, vector<2x16x32xf32>
    %109 = vector.shape_cast %108 : vector<2x16x32xf32> to vector<32x32xf32>
    %cst_125 = arith.constant dense<0.000000e+00> : vector<32x32xf32>
    %110 = tpu.matmul %109, %94, %cst_125 {dimension_numbers = #tpu.dot_dimension_numbers<[1], [0], [0], [1], [0, 0, 1, 1], [], []>} : vector<32x32xf32>, vector<32x32xf32>, vector<32x32xf32> -> vector<32x32xf32>
    %111 = arith.addf %107, %110 : vector<32x32xf32>
    %c0_126 = arith.constant 0 : index
    %c9_127 = arith.constant 9 : index
    %c0_128 = arith.constant 0 : index
    %112 = vector.load %arg17[%c0_126, %c9_127, %c0_128] : memref<2x32x32xf32, #tpu.memory_space<vmem>>, vector<2x16x32xf32>
    %113 = vector.shape_cast %112 : vector<2x16x32xf32> to vector<32x32xf32>
    %cst_129 = arith.constant dense<0.000000e+00> : vector<32x32xf32>
    %114 = tpu.matmul %113, %96, %cst_129 {dimension_numbers = #tpu.dot_dimension_numbers<[1], [0], [0], [1], [0, 0, 1, 1], [], []>} : vector<32x32xf32>, vector<32x32xf32>, vector<32x32xf32> -> vector<32x32xf32>
    %115 = arith.addf %111, %114 : vector<32x32xf32>
    %c0_130 = arith.constant 0 : index
    %c10_131 = arith.constant 10 : index
    %c0_132 = arith.constant 0 : index
    %116 = vector.load %arg17[%c0_130, %c10_131, %c0_132] : memref<2x32x32xf32, #tpu.memory_space<vmem>>, vector<2x16x32xf32>
    %117 = vector.shape_cast %116 : vector<2x16x32xf32> to vector<32x32xf32>
    %cst_133 = arith.constant dense<0.000000e+00> : vector<32x32xf32>
    %118 = tpu.matmul %117, %98, %cst_133 {dimension_numbers = #tpu.dot_dimension_numbers<[1], [0], [0], [1], [0, 0, 1, 1], [], []>} : vector<32x32xf32>, vector<32x32xf32>, vector<32x32xf32> -> vector<32x32xf32>
    %119 = arith.addf %115, %118 : vector<32x32xf32>
    %120 = vector.broadcast %100 : vector<1x32xf32> to vector<32x32xf32>
    %121 = arith.addf %119, %120 : vector<32x32xf32>
    %c0_134 = arith.constant 0 : index
    %c0_135 = arith.constant 0 : index
    %c0_136 = arith.constant 0 : index
    %122 = vector.load %arg12[%c0_134, %c0_135, %c0_136] : memref<3x1x32xf32, #tpu.memory_space<vmem>>, vector<1x1x32xf32>
    %123 = vector.shape_cast %122 : vector<1x1x32xf32> to vector<1x32xf32>
    %124 = vector.broadcast %123 : vector<1x32xf32> to vector<32x32xf32>
    %125 = arith.mulf %121, %124 : vector<32x32xf32>
    %c0_137 = arith.constant 0 : index
    %c0_138 = arith.constant 0 : index
    %c0_139 = arith.constant 0 : index
    %126 = vector.load %arg13[%c0_137, %c0_138, %c0_139] : memref<3x1x32xf32, #tpu.memory_space<vmem>>, vector<1x1x32xf32>
    %127 = vector.shape_cast %126 : vector<1x1x32xf32> to vector<1x32xf32>
    %128 = vector.broadcast %127 : vector<1x32xf32> to vector<32x32xf32>
    %129 = arith.addf %125, %128 : vector<32x32xf32>
    %130 = arith.addf %129, %41 : vector<32x32xf32>
    %cst_140 = arith.constant 0.000000e+00 : f32
    %131 = vector.broadcast %cst_140 : f32 to vector<32x32xf32>
    %132 = arith.maximumf %130, %131 : vector<32x32xf32>
    %133 = vector.shape_cast %132 : vector<32x32xf32> to vector<2x16x32xf32>
    %c0_141 = arith.constant 0 : index
    %c8_142 = arith.constant 8 : index
    %c0_143 = arith.constant 0 : index
    %134 = vector.load %arg17[%c0_141, %c8_142, %c0_143] : memref<2x32x32xf32, #tpu.memory_space<vmem>>, vector<2x16x32xf32>
    tpu.vector_store %arg17[%c0_141, %c8_142, %c0_143], %133 {strides = array<i32>} : memref<2x32x32xf32, #tpu.memory_space<vmem>>, vector<2x16x32xf32>,
    %c1_144 = arith.constant 1 : index
    %c0_145 = arith.constant 0 : index
    %c0_146 = arith.constant 0 : index
    %c0_147 = arith.constant 0 : index
    %135 = vector.load %arg6[%c1_144, %c0_145, %c0_146, %c0_147] : memref<3x5x32x32xf32, #tpu.memory_space<vmem>>, vector<1x1x32x32xf32>
    %136 = vector.shape_cast %135 : vector<1x1x32x32xf32> to vector<32x32xf32>
    %c1_148 = arith.constant 1 : index
    %c1_149 = arith.constant 1 : index
    %c0_150 = arith.constant 0 : index
    %c0_151 = arith.constant 0 : index
    %137 = vector.load %arg6[%c1_148, %c1_149, %c0_150, %c0_151] : memref<3x5x32x32xf32, #tpu.memory_space<vmem>>, vector<1x1x32x32xf32>
    %138 = vector.shape_cast %137 : vector<1x1x32x32xf32> to vector<32x32xf32>
    %c1_152 = arith.constant 1 : index
    %c2_153 = arith.constant 2 : index
    %c0_154 = arith.constant 0 : index
    %c0_155 = arith.constant 0 : index
    %139 = vector.load %arg6[%c1_152, %c2_153, %c0_154, %c0_155] : memref<3x5x32x32xf32, #tpu.memory_space<vmem>>, vector<1x1x32x32xf32>
    %140 = vector.shape_cast %139 : vector<1x1x32x32xf32> to vector<32x32xf32>
    %c1_156 = arith.constant 1 : index
    %c3_157 = arith.constant 3 : index
    %c0_158 = arith.constant 0 : index
    %c0_159 = arith.constant 0 : index
    %141 = vector.load %arg6[%c1_156, %c3_157, %c0_158, %c0_159] : memref<3x5x32x32xf32, #tpu.memory_space<vmem>>, vector<1x1x32x32xf32>
    %142 = vector.shape_cast %141 : vector<1x1x32x32xf32> to vector<32x32xf32>
    %c1_160 = arith.constant 1 : index
    %c4_161 = arith.constant 4 : index
    %c0_162 = arith.constant 0 : index
    %c0_163 = arith.constant 0 : index
    %143 = vector.load %arg6[%c1_160, %c4_161, %c0_162, %c0_163] : memref<3x5x32x32xf32, #tpu.memory_space<vmem>>, vector<1x1x32x32xf32>
    %144 = vector.shape_cast %143 : vector<1x1x32x32xf32> to vector<32x32xf32>
    %c1_164 = arith.constant 1 : index
    %c0_165 = arith.constant 0 : index
    %c0_166 = arith.constant 0 : index
    %145 = vector.load %arg7[%c1_164, %c0_165, %c0_166] : memref<3x1x32xf32, #tpu.memory_space<vmem>>, vector<1x1x32xf32>
    %146 = vector.shape_cast %145 : vector<1x1x32xf32> to vector<1x32xf32>
    %c0_167 = arith.constant 0 : index
    %c6_168 = arith.constant 6 : index
    %c0_169 = arith.constant 0 : index
    %147 = vector.load %arg17[%c0_167, %c6_168, %c0_169] : memref<2x32x32xf32, #tpu.memory_space<vmem>>, vector<2x16x32xf32>
    %148 = vector.shape_cast %147 : vector<2x16x32xf32> to vector<32x32xf32>
    %cst_170 = arith.constant dense<0.000000e+00> : vector<32x32xf32>
    %149 = tpu.matmul %148, %136, %cst_170 {dimension_numbers = #tpu.dot_dimension_numbers<[1], [0], [0], [1], [0, 0, 1, 1], [], []>} : vector<32x32xf32>, vector<32x32xf32>, vector<32x32xf32> -> vector<32x32xf32>
    %c0_171 = arith.constant 0 : index
    %c7_172 = arith.constant 7 : index
    %c0_173 = arith.constant 0 : index
    %150 = vector.load %arg17[%c0_171, %c7_172, %c0_173] : memref<2x32x32xf32, #tpu.memory_space<vmem>>, vector<2x16x32xf32>
    %151 = vector.shape_cast %150 : vector<2x16x32xf32> to vector<32x32xf32>
    %cst_174 = arith.constant dense<0.000000e+00> : vector<32x32xf32>
    %152 = tpu.matmul %151, %138, %cst_174 {dimension_numbers = #tpu.dot_dimension_numbers<[1], [0], [0], [1], [0, 0, 1, 1], [], []>} : vector<32x32xf32>, vector<32x32xf32>, vector<32x32xf32> -> vector<32x32xf32>
    %153 = arith.addf %149, %152 : vector<32x32xf32>
    %c0_175 = arith.constant 0 : index
    %c8_176 = arith.constant 8 : index
    %c0_177 = arith.constant 0 : index
    %154 = vector.load %arg17[%c0_175, %c8_176, %c0_177] : memref<2x32x32xf32, #tpu.memory_space<vmem>>, vector<2x16x32xf32>
    %155 = vector.shape_cast %154 : vector<2x16x32xf32> to vector<32x32xf32>
    %cst_178 = arith.constant dense<0.000000e+00> : vector<32x32xf32>
    %156 = tpu.matmul %155, %140, %cst_178 {dimension_numbers = #tpu.dot_dimension_numbers<[1], [0], [0], [1], [0, 0, 1, 1], [], []>} : vector<32x32xf32>, vector<32x32xf32>, vector<32x32xf32> -> vector<32x32xf32>
    %157 = arith.addf %153, %156 : vector<32x32xf32>
    %c0_179 = arith.constant 0 : index
    %c9_180 = arith.constant 9 : index
    %c0_181 = arith.constant 0 : index
    %158 = vector.load %arg17[%c0_179, %c9_180, %c0_181] : memref<2x32x32xf32, #tpu.memory_space<vmem>>, vector<2x16x32xf32>
    %159 = vector.shape_cast %158 : vector<2x16x32xf32> to vector<32x32xf32>
    %cst_182 = arith.constant dense<0.000000e+00> : vector<32x32xf32>
    %160 = tpu.matmul %159, %142, %cst_182 {dimension_numbers = #tpu.dot_dimension_numbers<[1], [0], [0], [1], [0, 0, 1, 1], [], []>} : vector<32x32xf32>, vector<32x32xf32>, vector<32x32xf32> -> vector<32x32xf32>
    %161 = arith.addf %157, %160 : vector<32x32xf32>
    %c0_183 = arith.constant 0 : index
    %c10_184 = arith.constant 10 : index
    %c0_185 = arith.constant 0 : index
    %162 = vector.load %arg17[%c0_183, %c10_184, %c0_185] : memref<2x32x32xf32, #tpu.memory_space<vmem>>, vector<2x16x32xf32>
    %163 = vector.shape_cast %162 : vector<2x16x32xf32> to vector<32x32xf32>
    %cst_186 = arith.constant dense<0.000000e+00> : vector<32x32xf32>
    %164 = tpu.matmul %163, %144, %cst_186 {dimension_numbers = #tpu.dot_dimension_numbers<[1], [0], [0], [1], [0, 0, 1, 1], [], []>} : vector<32x32xf32>, vector<32x32xf32>, vector<32x32xf32> -> vector<32x32xf32>
    %165 = arith.addf %161, %164 : vector<32x32xf32>
    %166 = vector.broadcast %146 : vector<1x32xf32> to vector<32x32xf32>
    %167 = arith.addf %165, %166 : vector<32x32xf32>
    %c1_187 = arith.constant 1 : index
    %c0_188 = arith.constant 0 : index
    %c0_189 = arith.constant 0 : index
    %168 = vector.load %arg8[%c1_187, %c0_188, %c0_189] : memref<3x1x32xf32, #tpu.memory_space<vmem>>, vector<1x1x32xf32>
    %169 = vector.shape_cast %168 : vector<1x1x32xf32> to vector<1x32xf32>
    %170 = vector.broadcast %169 : vector<1x32xf32> to vector<32x32xf32>
    %171 = arith.mulf %167, %170 : vector<32x32xf32>
    %c1_190 = arith.constant 1 : index
    %c0_191 = arith.constant 0 : index
    %c0_192 = arith.constant 0 : index
    %172 = vector.load %arg9[%c1_190, %c0_191, %c0_192] : memref<3x1x32xf32, #tpu.memory_space<vmem>>, vector<1x1x32xf32>
    %173 = vector.shape_cast %172 : vector<1x1x32xf32> to vector<1x32xf32>
    %174 = vector.broadcast %173 : vector<1x32xf32> to vector<32x32xf32>
    %175 = arith.addf %171, %174 : vector<32x32xf32>
    %cst_193 = arith.constant 0.000000e+00 : f32
    %176 = vector.broadcast %cst_193 : f32 to vector<32x32xf32>
    %177 = arith.maximumf %175, %176 : vector<32x32xf32>
    %178 = vector.shape_cast %177 : vector<32x32xf32> to vector<2x16x32xf32>
    %c0_194 = arith.constant 0 : index
    %c8_195 = arith.constant 8 : index
    %c0_196 = arith.constant 0 : index
    %179 = vector.load %arg17[%c0_194, %c8_195, %c0_196] : memref<2x32x32xf32, #tpu.memory_space<vmem>>, vector<2x16x32xf32>
    tpu.vector_store %arg17[%c0_194, %c8_195, %c0_196], %178 {strides = array<i32>} : memref<2x32x32xf32, #tpu.memory_space<vmem>>, vector<2x16x32xf32>,
    %c1_197 = arith.constant 1 : index
    %c0_198 = arith.constant 0 : index
    %c0_199 = arith.constant 0 : index
    %c0_200 = arith.constant 0 : index
    %180 = vector.load %arg10[%c1_197, %c0_198, %c0_199, %c0_200] : memref<3x5x32x32xf32, #tpu.memory_space<vmem>>, vector<1x1x32x32xf32>
    %181 = vector.shape_cast %180 : vector<1x1x32x32xf32> to vector<32x32xf32>
    %c1_201 = arith.constant 1 : index
    %c1_202 = arith.constant 1 : index
    %c0_203 = arith.constant 0 : index
    %c0_204 = arith.constant 0 : index
    %182 = vector.load %arg10[%c1_201, %c1_202, %c0_203, %c0_204] : memref<3x5x32x32xf32, #tpu.memory_space<vmem>>, vector<1x1x32x32xf32>
    %183 = vector.shape_cast %182 : vector<1x1x32x32xf32> to vector<32x32xf32>
    %c1_205 = arith.constant 1 : index
    %c2_206 = arith.constant 2 : index
    %c0_207 = arith.constant 0 : index
    %c0_208 = arith.constant 0 : index
    %184 = vector.load %arg10[%c1_205, %c2_206, %c0_207, %c0_208] : memref<3x5x32x32xf32, #tpu.memory_space<vmem>>, vector<1x1x32x32xf32>
    %185 = vector.shape_cast %184 : vector<1x1x32x32xf32> to vector<32x32xf32>
    %c1_209 = arith.constant 1 : index
    %c3_210 = arith.constant 3 : index
    %c0_211 = arith.constant 0 : index
    %c0_212 = arith.constant 0 : index
    %186 = vector.load %arg10[%c1_209, %c3_210, %c0_211, %c0_212] : memref<3x5x32x32xf32, #tpu.memory_space<vmem>>, vector<1x1x32x32xf32>
    %187 = vector.shape_cast %186 : vector<1x1x32x32xf32> to vector<32x32xf32>
    %c1_213 = arith.constant 1 : index
    %c4_214 = arith.constant 4 : index
    %c0_215 = arith.constant 0 : index
    %c0_216 = arith.constant 0 : index
    %188 = vector.load %arg10[%c1_213, %c4_214, %c0_215, %c0_216] : memref<3x5x32x32xf32, #tpu.memory_space<vmem>>, vector<1x1x32x32xf32>
    %189 = vector.shape_cast %188 : vector<1x1x32x32xf32> to vector<32x32xf32>
    %c1_217 = arith.constant 1 : index
    %c0_218 = arith.constant 0 : index
    %c0_219 = arith.constant 0 : index
    %190 = vector.load %arg11[%c1_217, %c0_218, %c0_219] : memref<3x1x32xf32, #tpu.memory_space<vmem>>, vector<1x1x32xf32>
    %191 = vector.shape_cast %190 : vector<1x1x32xf32> to vector<1x32xf32>
    %c0_220 = arith.constant 0 : index
    %c6_221 = arith.constant 6 : index
    %c0_222 = arith.constant 0 : index
    %192 = vector.load %arg17[%c0_220, %c6_221, %c0_222] : memref<2x32x32xf32, #tpu.memory_space<vmem>>, vector<2x16x32xf32>
    %193 = vector.shape_cast %192 : vector<2x16x32xf32> to vector<32x32xf32>
    %cst_223 = arith.constant dense<0.000000e+00> : vector<32x32xf32>
    %194 = tpu.matmul %193, %181, %cst_223 {dimension_numbers = #tpu.dot_dimension_numbers<[1], [0], [0], [1], [0, 0, 1, 1], [], []>} : vector<32x32xf32>, vector<32x32xf32>, vector<32x32xf32> -> vector<32x32xf32>
    %c0_224 = arith.constant 0 : index
    %c7_225 = arith.constant 7 : index
    %c0_226 = arith.constant 0 : index
    %195 = vector.load %arg17[%c0_224, %c7_225, %c0_226] : memref<2x32x32xf32, #tpu.memory_space<vmem>>, vector<2x16x32xf32>
    %196 = vector.shape_cast %195 : vector<2x16x32xf32> to vector<32x32xf32>
    %cst_227 = arith.constant dense<0.000000e+00> : vector<32x32xf32>
    %197 = tpu.matmul %196, %183, %cst_227 {dimension_numbers = #tpu.dot_dimension_numbers<[1], [0], [0], [1], [0, 0, 1, 1], [], []>} : vector<32x32xf32>, vector<32x32xf32>, vector<32x32xf32> -> vector<32x32xf32>
    %198 = arith.addf %194, %197 : vector<32x32xf32>
    %c0_228 = arith.constant 0 : index
    %c8_229 = arith.constant 8 : index
    %c0_230 = arith.constant 0 : index
    %199 = vector.load %arg17[%c0_228, %c8_229, %c0_230] : memref<2x32x32xf32, #tpu.memory_space<vmem>>, vector<2x16x32xf32>
    %200 = vector.shape_cast %199 : vector<2x16x32xf32> to vector<32x32xf32>
    %cst_231 = arith.constant dense<0.000000e+00> : vector<32x32xf32>
    %201 = tpu.matmul %200, %185, %cst_231 {dimension_numbers = #tpu.dot_dimension_numbers<[1], [0], [0], [1], [0, 0, 1, 1], [], []>} : vector<32x32xf32>, vector<32x32xf32>, vector<32x32xf32> -> vector<32x32xf32>
    %202 = arith.addf %198, %201 : vector<32x32xf32>
    %c0_232 = arith.constant 0 : index
    %c9_233 = arith.constant 9 : index
    %c0_234 = arith.constant 0 : index
    %203 = vector.load %arg17[%c0_232, %c9_233, %c0_234] : memref<2x32x32xf32, #tpu.memory_space<vmem>>, vector<2x16x32xf32>
    %204 = vector.shape_cast %203 : vector<2x16x32xf32> to vector<32x32xf32>
    %cst_235 = arith.constant dense<0.000000e+00> : vector<32x32xf32>
    %205 = tpu.matmul %204, %187, %cst_235 {dimension_numbers = #tpu.dot_dimension_numbers<[1], [0], [0], [1], [0, 0, 1, 1], [], []>} : vector<32x32xf32>, vector<32x32xf32>, vector<32x32xf32> -> vector<32x32xf32>
    %206 = arith.addf %202, %205 : vector<32x32xf32>
    %c0_236 = arith.constant 0 : index
    %c10_237 = arith.constant 10 : index
    %c0_238 = arith.constant 0 : index
    %207 = vector.load %arg17[%c0_236, %c10_237, %c0_238] : memref<2x32x32xf32, #tpu.memory_space<vmem>>, vector<2x16x32xf32>
    %208 = vector.shape_cast %207 : vector<2x16x32xf32> to vector<32x32xf32>
    %cst_239 = arith.constant dense<0.000000e+00> : vector<32x32xf32>
    %209 = tpu.matmul %208, %189, %cst_239 {dimension_numbers = #tpu.dot_dimension_numbers<[1], [0], [0], [1], [0, 0, 1, 1], [], []>} : vector<32x32xf32>, vector<32x32xf32>, vector<32x32xf32> -> vector<32x32xf32>
    %210 = arith.addf %206, %209 : vector<32x32xf32>
    %211 = vector.broadcast %191 : vector<1x32xf32> to vector<32x32xf32>
    %212 = arith.addf %210, %211 : vector<32x32xf32>
    %c1_240 = arith.constant 1 : index
    %c0_241 = arith.constant 0 : index
    %c0_242 = arith.constant 0 : index
    %213 = vector.load %arg12[%c1_240, %c0_241, %c0_242] : memref<3x1x32xf32, #tpu.memory_space<vmem>>, vector<1x1x32xf32>
    %214 = vector.shape_cast %213 : vector<1x1x32xf32> to vector<1x32xf32>
    %215 = vector.broadcast %214 : vector<1x32xf32> to vector<32x32xf32>
    %216 = arith.mulf %212, %215 : vector<32x32xf32>
    %c1_243 = arith.constant 1 : index
    %c0_244 = arith.constant 0 : index
    %c0_245 = arith.constant 0 : index
    %217 = vector.load %arg13[%c1_243, %c0_244, %c0_245] : memref<3x1x32xf32, #tpu.memory_space<vmem>>, vector<1x1x32xf32>
    %218 = vector.shape_cast %217 : vector<1x1x32xf32> to vector<1x32xf32>
    %219 = vector.broadcast %218 : vector<1x32xf32> to vector<32x32xf32>
    %220 = arith.addf %216, %219 : vector<32x32xf32>
    %221 = arith.addf %220, %132 : vector<32x32xf32>
    %cst_246 = arith.constant 0.000000e+00 : f32
    %222 = vector.broadcast %cst_246 : f32 to vector<32x32xf32>
    %223 = arith.maximumf %221, %222 : vector<32x32xf32>
    %224 = vector.shape_cast %223 : vector<32x32xf32> to vector<2x16x32xf32>
    %c0_247 = arith.constant 0 : index
    %c8_248 = arith.constant 8 : index
    %c0_249 = arith.constant 0 : index
    %225 = vector.load %arg17[%c0_247, %c8_248, %c0_249] : memref<2x32x32xf32, #tpu.memory_space<vmem>>, vector<2x16x32xf32>
    tpu.vector_store %arg17[%c0_247, %c8_248, %c0_249], %224 {strides = array<i32>} : memref<2x32x32xf32, #tpu.memory_space<vmem>>, vector<2x16x32xf32>,
    %c2_250 = arith.constant 2 : index
    %c0_251 = arith.constant 0 : index
    %c0_252 = arith.constant 0 : index
    %c0_253 = arith.constant 0 : index
    %226 = vector.load %arg6[%c2_250, %c0_251, %c0_252, %c0_253] : memref<3x5x32x32xf32, #tpu.memory_space<vmem>>, vector<1x1x32x32xf32>
    %227 = vector.shape_cast %226 : vector<1x1x32x32xf32> to vector<32x32xf32>
    %c2_254 = arith.constant 2 : index
    %c1_255 = arith.constant 1 : index
    %c0_256 = arith.constant 0 : index
    %c0_257 = arith.constant 0 : index
    %228 = vector.load %arg6[%c2_254, %c1_255, %c0_256, %c0_257] : memref<3x5x32x32xf32, #tpu.memory_space<vmem>>, vector<1x1x32x32xf32>
    %229 = vector.shape_cast %228 : vector<1x1x32x32xf32> to vector<32x32xf32>
    %c2_258 = arith.constant 2 : index
    %c2_259 = arith.constant 2 : index
    %c0_260 = arith.constant 0 : index
    %c0_261 = arith.constant 0 : index
    %230 = vector.load %arg6[%c2_258, %c2_259, %c0_260, %c0_261] : memref<3x5x32x32xf32, #tpu.memory_space<vmem>>, vector<1x1x32x32xf32>
    %231 = vector.shape_cast %230 : vector<1x1x32x32xf32> to vector<32x32xf32>
    %c2_262 = arith.constant 2 : index
    %c3_263 = arith.constant 3 : index
    %c0_264 = arith.constant 0 : index
    %c0_265 = arith.constant 0 : index
    %232 = vector.load %arg6[%c2_262, %c3_263, %c0_264, %c0_265] : memref<3x5x32x32xf32, #tpu.memory_space<vmem>>, vector<1x1x32x32xf32>
    %233 = vector.shape_cast %232 : vector<1x1x32x32xf32> to vector<32x32xf32>
    %c2_266 = arith.constant 2 : index
    %c4_267 = arith.constant 4 : index
    %c0_268 = arith.constant 0 : index
    %c0_269 = arith.constant 0 : index
    %234 = vector.load %arg6[%c2_266, %c4_267, %c0_268, %c0_269] : memref<3x5x32x32xf32, #tpu.memory_space<vmem>>, vector<1x1x32x32xf32>
    %235 = vector.shape_cast %234 : vector<1x1x32x32xf32> to vector<32x32xf32>
    %c2_270 = arith.constant 2 : index
    %c0_271 = arith.constant 0 : index
    %c0_272 = arith.constant 0 : index
    %236 = vector.load %arg7[%c2_270, %c0_271, %c0_272] : memref<3x1x32xf32, #tpu.memory_space<vmem>>, vector<1x1x32xf32>
    %237 = vector.shape_cast %236 : vector<1x1x32xf32> to vector<1x32xf32>
    %c0_273 = arith.constant 0 : index
    %c6_274 = arith.constant 6 : index
    %c0_275 = arith.constant 0 : index
    %238 = vector.load %arg17[%c0_273, %c6_274, %c0_275] : memref<2x32x32xf32, #tpu.memory_space<vmem>>, vector<2x16x32xf32>
    %239 = vector.shape_cast %238 : vector<2x16x32xf32> to vector<32x32xf32>
    %cst_276 = arith.constant dense<0.000000e+00> : vector<32x32xf32>
    %240 = tpu.matmul %239, %227, %cst_276 {dimension_numbers = #tpu.dot_dimension_numbers<[1], [0], [0], [1], [0, 0, 1, 1], [], []>} : vector<32x32xf32>, vector<32x32xf32>, vector<32x32xf32> -> vector<32x32xf32>
    %c0_277 = arith.constant 0 : index
    %c7_278 = arith.constant 7 : index
    %c0_279 = arith.constant 0 : index
    %241 = vector.load %arg17[%c0_277, %c7_278, %c0_279] : memref<2x32x32xf32, #tpu.memory_space<vmem>>, vector<2x16x32xf32>
    %242 = vector.shape_cast %241 : vector<2x16x32xf32> to vector<32x32xf32>
    %cst_280 = arith.constant dense<0.000000e+00> : vector<32x32xf32>
    %243 = tpu.matmul %242, %229, %cst_280 {dimension_numbers = #tpu.dot_dimension_numbers<[1], [0], [0], [1], [0, 0, 1, 1], [], []>} : vector<32x32xf32>, vector<32x32xf32>, vector<32x32xf32> -> vector<32x32xf32>
    %244 = arith.addf %240, %243 : vector<32x32xf32>
    %c0_281 = arith.constant 0 : index
    %c8_282 = arith.constant 8 : index
    %c0_283 = arith.constant 0 : index
    %245 = vector.load %arg17[%c0_281, %c8_282, %c0_283] : memref<2x32x32xf32, #tpu.memory_space<vmem>>, vector<2x16x32xf32>
    %246 = vector.shape_cast %245 : vector<2x16x32xf32> to vector<32x32xf32>
    %cst_284 = arith.constant dense<0.000000e+00> : vector<32x32xf32>
    %247 = tpu.matmul %246, %231, %cst_284 {dimension_numbers = #tpu.dot_dimension_numbers<[1], [0], [0], [1], [0, 0, 1, 1], [], []>} : vector<32x32xf32>, vector<32x32xf32>, vector<32x32xf32> -> vector<32x32xf32>
    %248 = arith.addf %244, %247 : vector<32x32xf32>
    %c0_285 = arith.constant 0 : index
    %c9_286 = arith.constant 9 : index
    %c0_287 = arith.constant 0 : index
    %249 = vector.load %arg17[%c0_285, %c9_286, %c0_287] : memref<2x32x32xf32, #tpu.memory_space<vmem>>, vector<2x16x32xf32>
    %250 = vector.shape_cast %249 : vector<2x16x32xf32> to vector<32x32xf32>
    %cst_288 = arith.constant dense<0.000000e+00> : vector<32x32xf32>
    %251 = tpu.matmul %250, %233, %cst_288 {dimension_numbers = #tpu.dot_dimension_numbers<[1], [0], [0], [1], [0, 0, 1, 1], [], []>} : vector<32x32xf32>, vector<32x32xf32>, vector<32x32xf32> -> vector<32x32xf32>
    %252 = arith.addf %248, %251 : vector<32x32xf32>
    %c0_289 = arith.constant 0 : index
    %c10_290 = arith.constant 10 : index
    %c0_291 = arith.constant 0 : index
    %253 = vector.load %arg17[%c0_289, %c10_290, %c0_291] : memref<2x32x32xf32, #tpu.memory_space<vmem>>, vector<2x16x32xf32>
    %254 = vector.shape_cast %253 : vector<2x16x32xf32> to vector<32x32xf32>
    %cst_292 = arith.constant dense<0.000000e+00> : vector<32x32xf32>
    %255 = tpu.matmul %254, %235, %cst_292 {dimension_numbers = #tpu.dot_dimension_numbers<[1], [0], [0], [1], [0, 0, 1, 1], [], []>} : vector<32x32xf32>, vector<32x32xf32>, vector<32x32xf32> -> vector<32x32xf32>
    %256 = arith.addf %252, %255 : vector<32x32xf32>
    %257 = vector.broadcast %237 : vector<1x32xf32> to vector<32x32xf32>
    %258 = arith.addf %256, %257 : vector<32x32xf32>
    %c2_293 = arith.constant 2 : index
    %c0_294 = arith.constant 0 : index
    %c0_295 = arith.constant 0 : index
    %259 = vector.load %arg8[%c2_293, %c0_294, %c0_295] : memref<3x1x32xf32, #tpu.memory_space<vmem>>, vector<1x1x32xf32>
    %260 = vector.shape_cast %259 : vector<1x1x32xf32> to vector<1x32xf32>
    %261 = vector.broadcast %260 : vector<1x32xf32> to vector<32x32xf32>
    %262 = arith.mulf %258, %261 : vector<32x32xf32>
    %c2_296 = arith.constant 2 : index
    %c0_297 = arith.constant 0 : index
    %c0_298 = arith.constant 0 : index
    %263 = vector.load %arg9[%c2_296, %c0_297, %c0_298] : memref<3x1x32xf32, #tpu.memory_space<vmem>>, vector<1x1x32xf32>
    %264 = vector.shape_cast %263 : vector<1x1x32xf32> to vector<1x32xf32>
    %265 = vector.broadcast %264 : vector<1x32xf32> to vector<32x32xf32>
    %266 = arith.addf %262, %265 : vector<32x32xf32>
    %cst_299 = arith.constant 0.000000e+00 : f32
    %267 = vector.broadcast %cst_299 : f32 to vector<32x32xf32>
    %268 = arith.maximumf %266, %267 : vector<32x32xf32>
    %269 = vector.shape_cast %268 : vector<32x32xf32> to vector<2x16x32xf32>
    %c0_300 = arith.constant 0 : index
    %c8_301 = arith.constant 8 : index
    %c0_302 = arith.constant 0 : index
    %270 = vector.load %arg17[%c0_300, %c8_301, %c0_302] : memref<2x32x32xf32, #tpu.memory_space<vmem>>, vector<2x16x32xf32>
    tpu.vector_store %arg17[%c0_300, %c8_301, %c0_302], %269 {strides = array<i32>} : memref<2x32x32xf32, #tpu.memory_space<vmem>>, vector<2x16x32xf32>,
    %c2_303 = arith.constant 2 : index
    %c0_304 = arith.constant 0 : index
    %c0_305 = arith.constant 0 : index
    %c0_306 = arith.constant 0 : index
    %271 = vector.load %arg10[%c2_303, %c0_304, %c0_305, %c0_306] : memref<3x5x32x32xf32, #tpu.memory_space<vmem>>, vector<1x1x32x32xf32>
    %272 = vector.shape_cast %271 : vector<1x1x32x32xf32> to vector<32x32xf32>
    %c2_307 = arith.constant 2 : index
    %c1_308 = arith.constant 1 : index
    %c0_309 = arith.constant 0 : index
    %c0_310 = arith.constant 0 : index
    %273 = vector.load %arg10[%c2_307, %c1_308, %c0_309, %c0_310] : memref<3x5x32x32xf32, #tpu.memory_space<vmem>>, vector<1x1x32x32xf32>
    %274 = vector.shape_cast %273 : vector<1x1x32x32xf32> to vector<32x32xf32>
    %c2_311 = arith.constant 2 : index
    %c2_312 = arith.constant 2 : index
    %c0_313 = arith.constant 0 : index
    %c0_314 = arith.constant 0 : index
    %275 = vector.load %arg10[%c2_311, %c2_312, %c0_313, %c0_314] : memref<3x5x32x32xf32, #tpu.memory_space<vmem>>, vector<1x1x32x32xf32>
    %276 = vector.shape_cast %275 : vector<1x1x32x32xf32> to vector<32x32xf32>
    %c2_315 = arith.constant 2 : index
    %c3_316 = arith.constant 3 : index
    %c0_317 = arith.constant 0 : index
    %c0_318 = arith.constant 0 : index
    %277 = vector.load %arg10[%c2_315, %c3_316, %c0_317, %c0_318] : memref<3x5x32x32xf32, #tpu.memory_space<vmem>>, vector<1x1x32x32xf32>
    %278 = vector.shape_cast %277 : vector<1x1x32x32xf32> to vector<32x32xf32>
    %c2_319 = arith.constant 2 : index
    %c4_320 = arith.constant 4 : index
    %c0_321 = arith.constant 0 : index
    %c0_322 = arith.constant 0 : index
    %279 = vector.load %arg10[%c2_319, %c4_320, %c0_321, %c0_322] : memref<3x5x32x32xf32, #tpu.memory_space<vmem>>, vector<1x1x32x32xf32>
    %280 = vector.shape_cast %279 : vector<1x1x32x32xf32> to vector<32x32xf32>
    %c2_323 = arith.constant 2 : index
    %c0_324 = arith.constant 0 : index
    %c0_325 = arith.constant 0 : index
    %281 = vector.load %arg11[%c2_323, %c0_324, %c0_325] : memref<3x1x32xf32, #tpu.memory_space<vmem>>, vector<1x1x32xf32>
    %282 = vector.shape_cast %281 : vector<1x1x32xf32> to vector<1x32xf32>
    %c0_326 = arith.constant 0 : index
    %c6_327 = arith.constant 6 : index
    %c0_328 = arith.constant 0 : index
    %283 = vector.load %arg17[%c0_326, %c6_327, %c0_328] : memref<2x32x32xf32, #tpu.memory_space<vmem>>, vector<2x16x32xf32>
    %284 = vector.shape_cast %283 : vector<2x16x32xf32> to vector<32x32xf32>
    %cst_329 = arith.constant dense<0.000000e+00> : vector<32x32xf32>
    %285 = tpu.matmul %284, %272, %cst_329 {dimension_numbers = #tpu.dot_dimension_numbers<[1], [0], [0], [1], [0, 0, 1, 1], [], []>} : vector<32x32xf32>, vector<32x32xf32>, vector<32x32xf32> -> vector<32x32xf32>
    %c0_330 = arith.constant 0 : index
    %c7_331 = arith.constant 7 : index
    %c0_332 = arith.constant 0 : index
    %286 = vector.load %arg17[%c0_330, %c7_331, %c0_332] : memref<2x32x32xf32, #tpu.memory_space<vmem>>, vector<2x16x32xf32>
    %287 = vector.shape_cast %286 : vector<2x16x32xf32> to vector<32x32xf32>
    %cst_333 = arith.constant dense<0.000000e+00> : vector<32x32xf32>
    %288 = tpu.matmul %287, %274, %cst_333 {dimension_numbers = #tpu.dot_dimension_numbers<[1], [0], [0], [1], [0, 0, 1, 1], [], []>} : vector<32x32xf32>, vector<32x32xf32>, vector<32x32xf32> -> vector<32x32xf32>
    %289 = arith.addf %285, %288 : vector<32x32xf32>
    %c0_334 = arith.constant 0 : index
    %c8_335 = arith.constant 8 : index
    %c0_336 = arith.constant 0 : index
    %290 = vector.load %arg17[%c0_334, %c8_335, %c0_336] : memref<2x32x32xf32, #tpu.memory_space<vmem>>, vector<2x16x32xf32>
    %291 = vector.shape_cast %290 : vector<2x16x32xf32> to vector<32x32xf32>
    %cst_337 = arith.constant dense<0.000000e+00> : vector<32x32xf32>
    %292 = tpu.matmul %291, %276, %cst_337 {dimension_numbers = #tpu.dot_dimension_numbers<[1], [0], [0], [1], [0, 0, 1, 1], [], []>} : vector<32x32xf32>, vector<32x32xf32>, vector<32x32xf32> -> vector<32x32xf32>
    %293 = arith.addf %289, %292 : vector<32x32xf32>
    %c0_338 = arith.constant 0 : index
    %c9_339 = arith.constant 9 : index
    %c0_340 = arith.constant 0 : index
    %294 = vector.load %arg17[%c0_338, %c9_339, %c0_340] : memref<2x32x32xf32, #tpu.memory_space<vmem>>, vector<2x16x32xf32>
    %295 = vector.shape_cast %294 : vector<2x16x32xf32> to vector<32x32xf32>
    %cst_341 = arith.constant dense<0.000000e+00> : vector<32x32xf32>
    %296 = tpu.matmul %295, %278, %cst_341 {dimension_numbers = #tpu.dot_dimension_numbers<[1], [0], [0], [1], [0, 0, 1, 1], [], []>} : vector<32x32xf32>, vector<32x32xf32>, vector<32x32xf32> -> vector<32x32xf32>
    %297 = arith.addf %293, %296 : vector<32x32xf32>
    %c0_342 = arith.constant 0 : index
    %c10_343 = arith.constant 10 : index
    %c0_344 = arith.constant 0 : index
    %298 = vector.load %arg17[%c0_342, %c10_343, %c0_344] : memref<2x32x32xf32, #tpu.memory_space<vmem>>, vector<2x16x32xf32>
    %299 = vector.shape_cast %298 : vector<2x16x32xf32> to vector<32x32xf32>
    %cst_345 = arith.constant dense<0.000000e+00> : vector<32x32xf32>
    %300 = tpu.matmul %299, %280, %cst_345 {dimension_numbers = #tpu.dot_dimension_numbers<[1], [0], [0], [1], [0, 0, 1, 1], [], []>} : vector<32x32xf32>, vector<32x32xf32>, vector<32x32xf32> -> vector<32x32xf32>
    %301 = arith.addf %297, %300 : vector<32x32xf32>
    %302 = vector.broadcast %282 : vector<1x32xf32> to vector<32x32xf32>
    %303 = arith.addf %301, %302 : vector<32x32xf32>
    %c2_346 = arith.constant 2 : index
    %c0_347 = arith.constant 0 : index
    %c0_348 = arith.constant 0 : index
    %304 = vector.load %arg12[%c2_346, %c0_347, %c0_348] : memref<3x1x32xf32, #tpu.memory_space<vmem>>, vector<1x1x32xf32>
    %305 = vector.shape_cast %304 : vector<1x1x32xf32> to vector<1x32xf32>
    %306 = vector.broadcast %305 : vector<1x32xf32> to vector<32x32xf32>
    %307 = arith.mulf %303, %306 : vector<32x32xf32>
    %c2_349 = arith.constant 2 : index
    %c0_350 = arith.constant 0 : index
    %c0_351 = arith.constant 0 : index
    %308 = vector.load %arg13[%c2_349, %c0_350, %c0_351] : memref<3x1x32xf32, #tpu.memory_space<vmem>>, vector<1x1x32xf32>
    %309 = vector.shape_cast %308 : vector<1x1x32xf32> to vector<1x32xf32>
    %310 = vector.broadcast %309 : vector<1x32xf32> to vector<32x32xf32>
    %311 = arith.addf %307, %310 : vector<32x32xf32>
    %312 = arith.addf %311, %223 : vector<32x32xf32>
    %cst_352 = arith.constant 0.000000e+00 : f32
    %313 = vector.broadcast %cst_352 : f32 to vector<32x32xf32>
    %314 = arith.maximumf %312, %313 : vector<32x32xf32>
    %c0_353 = arith.constant 0 : index
    %c0_354 = arith.constant 0 : index
    %315 = vector.load %arg14[%c0_353, %c0_354] : memref<32x3xf32, #tpu.memory_space<vmem>>, vector<32x3xf32>
    %cst_355 = arith.constant dense<0.000000e+00> : vector<32x3xf32>
    %316 = tpu.matmul %314, %315, %cst_355 {dimension_numbers = #tpu.dot_dimension_numbers<[1], [0], [0], [1], [0, 0, 1, 1], [], []>} : vector<32x32xf32>, vector<32x3xf32>, vector<32x3xf32> -> vector<32x3xf32>
    %317 = vector.shape_cast %316 : vector<32x3xf32> to vector<2x16x3xf32>
    %cst_356 = arith.constant dense<0.000000e+00> : vector<2x3xf32>
    %318 = vector.multi_reduction <add>, %317, %cst_356 [1] : vector<2x16x3xf32> to vector<2x3xf32>
    %c0_357 = arith.constant 0 : index
    %c0_358 = arith.constant 0 : index
    %319 = vector.load %arg15[%c0_357, %c0_358] : memref<1x3xf32, #tpu.memory_space<vmem>>, vector<1x3xf32>
    %320 = vector.broadcast %319 : vector<1x3xf32> to vector<2x3xf32>
    %321 = arith.addf %318, %320 : vector<2x3xf32>
    %322 = arith.negf %321 : vector<2x3xf32>
    %323 = math.exp %322 : vector<2x3xf32>
    %cst_359 = arith.constant 1.000000e+00 : f32
    %324 = vector.broadcast %cst_359 : f32 to vector<2x3xf32>
    %325 = arith.addf %324, %323 : vector<2x3xf32>
    %326 = arith.divf %324, %325 : vector<2x3xf32>
    %327 = vector.shape_cast %326 : vector<2x3xf32> to vector<2x1x3xf32>
    %c0_360 = arith.constant 0 : index
    %c0_361 = arith.constant 0 : index
    %c0_362 = arith.constant 0 : index
    %328 = vector.load %arg16[%c0_360, %c0_361, %c0_362] : memref<2x1x3xf32, #tpu.memory_space<vmem>>, vector<2x1x3xf32>
    tpu.vector_store %arg16[%c0_360, %c0_361, %c0_362], %327 {strides = array<i32>} : memref<2x1x3xf32, #tpu.memory_space<vmem>>, vector<2x1x3xf32>,
    return
  }
  func.func @transform_0(%arg0: i32) -> (i32, i32, i32) {
    %c0_i32 = arith.constant 0 : i32
    %c0_i32_0 = arith.constant 0 : i32
    %c0_i32_1 = arith.constant 0 : i32
    return %arg0, %c0_i32, %c0_i32_0 : i32, i32, i32
  }
  func.func @transform_1(%arg0: i32) -> (i32, i32, i32) {
    %c0_i32 = arith.constant 0 : i32
    %c0_i32_0 = arith.constant 0 : i32
    %c0_i32_1 = arith.constant 0 : i32
    %c0_i32_2 = arith.constant 0 : i32
    return %c0_i32, %c0_i32_0, %c0_i32_1 : i32, i32, i32
  }
  func.func @transform_2(%arg0: i32) -> (i32, i32) {
    %c0_i32 = arith.constant 0 : i32
    %c0_i32_0 = arith.constant 0 : i32
    %c0_i32_1 = arith.constant 0 : i32
    return %c0_i32, %c0_i32_0 : i32, i32
  }
  func.func @transform_3(%arg0: i32) -> (i32, i32) {
    %c0_i32 = arith.constant 0 : i32
    %c0_i32_0 = arith.constant 0 : i32
    %c0_i32_1 = arith.constant 0 : i32
    return %c0_i32, %c0_i32_0 : i32, i32
  }
  func.func @transform_4(%arg0: i32) -> (i32, i32) {
    %c0_i32 = arith.constant 0 : i32
    %c0_i32_0 = arith.constant 0 : i32
    %c0_i32_1 = arith.constant 0 : i32
    return %c0_i32, %c0_i32_0 : i32, i32
  }
  func.func @transform_5(%arg0: i32) -> (i32, i32, i32, i32) {
    %c0_i32 = arith.constant 0 : i32
    %c0_i32_0 = arith.constant 0 : i32
    %c0_i32_1 = arith.constant 0 : i32
    %c0_i32_2 = arith.constant 0 : i32
    %c0_i32_3 = arith.constant 0 : i32
    return %c0_i32, %c0_i32_0, %c0_i32_1, %c0_i32_2 : i32, i32, i32, i32
  }
  func.func @transform_6(%arg0: i32) -> (i32, i32, i32) {
    %c0_i32 = arith.constant 0 : i32
    %c0_i32_0 = arith.constant 0 : i32
    %c0_i32_1 = arith.constant 0 : i32
    %c0_i32_2 = arith.constant 0 : i32
    return %c0_i32, %c0_i32_0, %c0_i32_1 : i32, i32, i32
  }
  func.func @transform_7(%arg0: i32) -> (i32, i32, i32) {
    %c0_i32 = arith.constant 0 : i32
    %c0_i32_0 = arith.constant 0 : i32
    %c0_i32_1 = arith.constant 0 : i32
    %c0_i32_2 = arith.constant 0 : i32
    return %c0_i32, %c0_i32_0, %c0_i32_1 : i32, i32, i32
  }
  func.func @transform_8(%arg0: i32) -> (i32, i32, i32) {
    %c0_i32 = arith.constant 0 : i32
    %c0_i32_0 = arith.constant 0 : i32
    %c0_i32_1 = arith.constant 0 : i32
    %c0_i32_2 = arith.constant 0 : i32
    return %c0_i32, %c0_i32_0, %c0_i32_1 : i32, i32, i32
  }
  func.func @transform_9(%arg0: i32) -> (i32, i32, i32, i32) {
    %c0_i32 = arith.constant 0 : i32
    %c0_i32_0 = arith.constant 0 : i32
    %c0_i32_1 = arith.constant 0 : i32
    %c0_i32_2 = arith.constant 0 : i32
    %c0_i32_3 = arith.constant 0 : i32
    return %c0_i32, %c0_i32_0, %c0_i32_1, %c0_i32_2 : i32, i32, i32, i32
  }
  func.func @transform_10(%arg0: i32) -> (i32, i32, i32) {
    %c0_i32 = arith.constant 0 : i32
    %c0_i32_0 = arith.constant 0 : i32
    %c0_i32_1 = arith.constant 0 : i32
    %c0_i32_2 = arith.constant 0 : i32
    return %c0_i32, %c0_i32_0, %c0_i32_1 : i32, i32, i32
  }
  func.func @transform_11(%arg0: i32) -> (i32, i32, i32) {
    %c0_i32 = arith.constant 0 : i32
    %c0_i32_0 = arith.constant 0 : i32
    %c0_i32_1 = arith.constant 0 : i32
    %c0_i32_2 = arith.constant 0 : i32
    return %c0_i32, %c0_i32_0, %c0_i32_1 : i32, i32, i32
  }
  func.func @transform_12(%arg0: i32) -> (i32, i32, i32) {
    %c0_i32 = arith.constant 0 : i32
    %c0_i32_0 = arith.constant 0 : i32
    %c0_i32_1 = arith.constant 0 : i32
    %c0_i32_2 = arith.constant 0 : i32
    return %c0_i32, %c0_i32_0, %c0_i32_1 : i32, i32, i32
  }
  func.func @transform_13(%arg0: i32) -> (i32, i32) {
    %c0_i32 = arith.constant 0 : i32
    %c0_i32_0 = arith.constant 0 : i32
    %c0_i32_1 = arith.constant 0 : i32
    return %c0_i32, %c0_i32_0 : i32, i32
  }
  func.func @transform_14(%arg0: i32) -> (i32, i32) {
    %c0_i32 = arith.constant 0 : i32
    %c0_i32_0 = arith.constant 0 : i32
    %c0_i32_1 = arith.constant 0 : i32
    return %c0_i32, %c0_i32_0 : i32, i32
  }
  func.func @transform_15(%arg0: i32) -> (i32, i32, i32) {
    %c0_i32 = arith.constant 0 : i32
    %c0_i32_0 = arith.constant 0 : i32
    %c0_i32_1 = arith.constant 0 : i32
    return %arg0, %c0_i32, %c0_i32_0 : i32, i32, i32
  }
}

</mosaic_0001>

<bundles_post_ra>
// kernel: tpu_custom_call.1
= control target key start
LH: loop header
LB: loop body
LE: loop exit
PB: predicated region body
PF: predicated region fallthrough
CT: control target
= control target key end

     0   :  { %20 = vsyncpa [#allocation4], 0  ;;  %s6281_s0 = inlined_call_operand.vmem [shape: f32[2,32,4], index: 0, kind: input, shape index: {}]   ;;  %s6282_s1 = inlined_call_operand.vmem [shape: f32[5,4,32], index: 1, kind: input, shape index: {}]   ;;  %s6283_s2 = inlined_call_operand.vmem [shape: f32[1,32], index: 2, kind: input, shape index: {}]   ;;  %s6284_s3 = inlined_call_operand.vmem [shape: f32[1,32], index: 3, kind: input, shape index: {}]   ;;  %s6285_s4 = inlined_call_operand.vmem [shape: f32[1,32], index: 4, kind: input, shape index: {}]   ;;  %s6286_s5 = inlined_call_operand.hbm [shape: f32[3,5,32,32], index: 5, kind: input, shape index: {}]   ;;  %s6287_s6 = inlined_call_operand.vmem [shape: f32[3,1,32], index: 6, kind: input, shape index: {}]   ;;  %s6288_s7 = inlined_call_operand.vmem [shape: f32[3,1,32], index: 7, kind: input, shape index: {}]   ;;  %s6289_s8 = inlined_call_operand.vmem [shape: f32[3,1,32], index: 8, kind: input, shape index: {}]   ;;  %s6290_s9 = inlined_call_operand.hbm [shape: f32[3,5,32,32], index: 9, kind: input, shape index: {}]   ;;  %s6291_s10 = inlined_call_operand.vmem [shape: f32[3,1,32], index: 10, kind: input, shape index: {}]   ;;  %s6292_s11 = inlined_call_operand.vmem [shape: f32[3,1,32], index: 11, kind: input, shape index: {}]   ;;  %s6293_s12 = inlined_call_operand.vmem [shape: f32[3,1,32], index: 12, kind: input, shape index: {}]   ;;  %s6294_s13 = inlined_call_operand.vmem [shape: f32[32,3], index: 13, kind: input, shape index: {}]   ;;  %s6295_s14 = inlined_call_operand.vmem [shape: f32[1,3], index: 14, kind: input, shape index: {}]   ;;  %s6296_s15 = inlined_call_operand.hbm [shape: f32[2,1,3], index: 15, kind: output, shape index: {}]  }
   0x1   :  { %21 = vsyncpa [#allocation7], 0 }
   0x2   :  { %22 = vsyncpa [#allocation5], 0  ;;  %s5734_s18 = smov [#allocation3]   ;;  %s5662_s22 = scalar_lea.hbm %s6286_s5, 7680 }
   0x3   :  { %s38_s19 = sshll.u32 %s5734_s18, 4  ;;  %p5663_p0 = scmp.ne.s32.totalorder %s6286_s5, %s5662_s22  ;;  %s39_s19 = int_to_ptr.vmem [resolvable:$true] %s38_s19 }
   0x4   :  { %p5666_p1 = scmp.lt.u32.totalorder %s5662_s22, %s6286_s5 }
   0x6   :  { %p5668_p2 = pnand %p5666_p1, %p5663_p0 }
   0x8   :  { %5671 = shalt.err (!%p5668_p2)
}
   0x9   :  { %s5672_s27 = scalar_lea.vmem %s39_s19, 7680  ;;  %p5677_p4 = scmp.lt.s32.totalorder %s39_s19, %s39_s19 }
   0xa   :  { %p5673_p3 = scmp.ne.s32.totalorder %s39_s19, %s5672_s27  ;;  %p5678_p5 = scmp.lt.s32.totalorder %s5672_s27, %s5672_s27 }
   0xc   :  { %p5679_p6 = por %p5678_p5, %p5677_p4 }
   0xe   :  { %p5680_p7 = pnand %p5679_p6, %p5673_p3 }
  0x10   :  { %5683 = shalt.err (!%p5680_p7)
}
  0x11   :  { %s5735_s28 = smov 128   ;;  %s5736_s29 = smov 8  }
  0x12   :  { %44 = dma.hbm_to_vmem [thread:$0]  %s6286_s5, 7680, %s39_s19, [#allocation4], %s5735_s28, %s5735_s28, %s5736_s29  }
  0x13   :  { %s5737_s17 = smov [#allocation6]   ;;  %s5684_s22 = scalar_lea.hbm %s6290_s9, 7680 }
  0x14   :  { %s56_s18 = sshll.u32 %s5737_s17, 4  ;;  %p5685_p8 = scmp.ne.s32.totalorder %s6290_s9, %s5684_s22  ;;  %s57_s18 = int_to_ptr.vmem [resolvable:$true] %s56_s18 }
  0x15   :  { %p5688_p9 = scmp.lt.u32.totalorder %s5684_s22, %s6290_s9 }
  0x17   :  { %p5690_p10 = pnand %p5688_p9, %p5685_p8 }
  0x19   :  { %5693 = shalt.err (!%p5690_p10)
}
  0x1a   :  { %s5694_s27 = scalar_lea.vmem %s57_s18, 7680  ;;  %p5699_p12 = scmp.lt.s32.totalorder %s57_s18, %s57_s18 }
  0x1b   :  { %p5695_p11 = scmp.ne.s32.totalorder %s57_s18, %s5694_s27  ;;  %p5700_p13 = scmp.lt.s32.totalorder %s5694_s27, %s5694_s27 }
  0x1d   :  { %p5701_p0 = por %p5700_p13, %p5699_p12 }
  0x1f   :  { %p5702_p1 = pnand %p5701_p0, %p5695_p11 }
  0x21   :  { %5705 = shalt.err (!%p5702_p1)
}
  0x22   :  { %62 = dma.hbm_to_vmem [thread:$0]  %s6290_s9, 7680, %s57_s18, [#allocation7], %s5735_s28, %s5735_s28, %s5736_s29  }
  0x23   :  { %5728 = dma.done.wait [#allocation4], 7680  }
  0x24   :  { %5729 = vsyncadd [#allocation4], 4294959616 }
  0x25   :  { %5730 = dma.done.wait [#allocation7], 7680  }
  0x26   :  { %5731 = vsyncadd [#allocation7], 4294959616  ;;  %vm119_vm0 = vcmask 1043456   ;;  %vm106_vm1 = vcmask 31744   ;;  %v4350_v0 = vld [vmem:[%s6282_s1 + $0x4] sm:$0xf] }
  0x27   :  { %v4351_v1 = vld [vmem:[%s6282_s1 + $0x8] sm:$0xf]  ;;  %4812 = vmatprep.subr.msk.mxu1 %vm119_vm0, %v4350_v0  ;;  %v103_v4 = vld [vmem:[%s6281_s0 + $0xf] sm:$0xff]  ;;  %v88_v9 = vld [vmem:[%s6282_s1] sm:$0xf]  ;;  %vm79_vm2 = vcmask 261120  }
  0x28   :  { %v102_v2 = vld [vmem:[%s6281_s0 + $0x7] sm:$0xff]  ;;  %4828 = vmatprep.subr.msk.mxu0 %vm119_vm0, %v4351_v1  ;;  %v309_v5 = vld [vmem:[%s6281_s0 + $0x10] sm:$0xff]  ;;  %4813 = vmatpush3.msk.msra.mxu1 %vm119_vm0, %v4350_v0  ;;  %v5738_v25 = vmov 0.0   ;;  %v680_v30 = vld [vmem:[#allocation3 + $0x38] sm:$0xff]  ;;  %vm4289_vm3 = vcmask 23552   ;;  %vm4329_vm4 = vcmask 16384  }
  0x29   :  { %v308_v3 = vld [vmem:[%s6281_s0 + $0x8] sm:$0xff]  ;;  %4814 = vmatprep.mubr.msk.f32.mxu1 %vm106_vm1, %v102_v2  ;;  %4829 = vmatpush3.msk.msra.mxu0 %vm119_vm0, %v4351_v1  ;;  %v311_v11 = vld [vmem:[%s6281_s0 + $0x30] sm:$0xff]  ;;  %82 = vst.msk [vmem:[#allocation2 + $0x10] sm:$0xff] %vm79_vm2, %v5738_v25  ;;  %80 = vst.msk [vmem:[#allocation2] sm:$0xff] %vm79_vm2, %v5738_v25 }
  0x2a   :  { %v4352_v6 = vld [vmem:[%s6282_s1 + $0xc] sm:$0xf]  ;;  %4830 = vmatprep.mubr.msk.f32.mxu0 %vm106_vm1, %v308_v3  ;;  %4815 = vmatmul.mubr.msk.f32.vlgmr.msra.gmra.mrb[0].mxu1 %vm106_vm1, %v103_v4  ;;  %v4353_v12 = vld [vmem:[%s6282_s1 + $0x10] sm:$0xf]  ;;  %81 = vst.msk [vmem:[#allocation2 + $0x8] sm:$0xff] %vm79_vm2, %v5738_v25  ;;  %83 = vst.msk [vmem:[#allocation2 + $0x18] sm:$0xff] %vm79_vm2, %v5738_v25 }
  0x2b   :  { %v104_v7 = vld [vmem:[%s6281_s0 + $0x27] sm:$0xff]  ;;  %4831 = vmatmul.mubr.msk.f32.vlgmr.msra.gmra.mrb[0].mxu0 %vm106_vm1, %v309_v5  ;;  %4836 = vmatprep.subr.msk.mxu0 %vm119_vm0, %v4352_v6  ;;  %v105_v10 = vld [vmem:[%s6281_s0 + $0x2f] sm:$0xff]  ;;  %84 = vst.msk [vmem:[#allocation2 + $0x20] sm:$0xff] %vm79_vm2, %v5738_v25  ;;  %85 = vst.msk [vmem:[#allocation2 + $0x28] sm:$0xff] %vm79_vm2, %v5738_v25 }
  0x2c   :  { %v310_v8 = vld [vmem:[%s6281_s0 + $0x28] sm:$0xff]  ;;  %4817 = vmatprep.mubr.msk.f32.mxu1 %vm106_vm1, %v104_v7  ;;  %4837 = vmatpush3.msk.msra.mxu0 %vm119_vm0, %v4352_v6  ;;  %v417_v16 = vld [vmem:[%s6281_s0 + $0x11] sm:$0xff]  ;;  %86 = vst.msk [vmem:[#allocation2 + $0x30] sm:$0xff] %vm79_vm2, %v5738_v25  ;;  %87 = vst.msk [vmem:[#allocation2 + $0x38] sm:$0xff] %vm79_vm2, %v5738_v25 }
  0x2d   :  { %4833 = vmatprep.mubr.msk.f32.mxu0 %vm106_vm1, %v310_v8  ;;  %v98_v13 = vld [vmem:[%s6281_s0 + $0x6] sm:$0xff]  ;;  %4820 = vmatprep.subr.msk.mxu1 %vm119_vm0, %v88_v9  ;;  %v99_v15 = vld [vmem:[%s6281_s0 + $0xe] sm:$0xff]  ;;  %v4379_v39 = vld [vmem:[%s6283_s2] ss:$0 sm:$0xff] }
  0x2e   :  { %v416_v14 = vld [vmem:[%s6281_s0 + $0x9] sm:$0xff]  ;;  %4844 = vmatprep.subr.msk.mxu0 %vm119_vm0, %v4353_v12  ;;  %4818 = vmatmul.mubr.msk.f32.gmra.mrb[2].mxu1 %vm106_vm1, %v105_v10  ;;  %v419_v20 = vld [vmem:[%s6281_s0 + $0x31] sm:$0xff]  ;;  %v677_v26 = vld [vmem:[#allocation3 + $0x20] sm:$0xff] }
  0x2f   :  { %4834 = vmatmul.mubr.msk.f32.gmra.mrb[2].mxu0 %vm106_vm1, %v311_v11  ;;  %4821 = vmatpush3.msk.msra.mxu1 %vm119_vm0, %v88_v9  ;;  %v100_v17 = vld [vmem:[%s6281_s0 + $0x26] sm:$0xff]  ;;  %v101_v19 = vld [vmem:[%s6281_s0 + $0x2e] sm:$0xff]  ;;  %v4380_v43 = vld [vmem:[%s6284_s3] ss:$0 sm:$0xff] }
  0x30   :  { %4822 = vmatprep.mubr.msk.f32.mxu1 %vm106_vm1, %v98_v13  ;;  %4838 = vmatprep.mubr.msk.f32.mxu0 %vm106_vm1, %v416_v14  ;;  %v418_v18 = vld [vmem:[%s6281_s0 + $0x29] sm:$0xff]  ;;  %v525_v22 = vld [vmem:[%s6281_s0 + $0x12] sm:$0xff]  ;;  %v672_v32 = vld [vmem:[#allocation3] sm:$0xff] }
  0x31   :  { %v524_v21 = vld [vmem:[%s6281_s0 + $0xa] sm:$0xff]  ;;  %v527_v24 = vld [vmem:[%s6281_s0 + $0x32] sm:$0xff]  ;;  %v4381_v46 = vld [vmem:[%s6285_s4] ss:$0 sm:$0xff] }
  0x32   :  { %4823 = vmatmul.mubr.msk.f32.vlgmr.msra.gmra.mrb[0].mxu1 %vm106_vm1, %v99_v15  ;;  %v526_v23 = vld [vmem:[%s6281_s0 + $0x2a] sm:$0xff]  ;;  %v675_v3 = vld [vmem:[#allocation3 + $0x18] sm:$0xff]  ;;  %v682_v7 = vld [vmem:[#allocation3 + $0x40] sm:$0xff] }
  0x33   :  { %4839 = vmatmul.mubr.msk.f32.vlgmr.msra.gmra.mrb[0].mxu0 %vm106_vm1, %v417_v16  ;;  %4825 = vmatprep.mubr.msk.f32.mxu1 %vm106_vm1, %v100_v17  ;;  %v678_v27 = vld [vmem:[#allocation3 + $0x28] sm:$0xff]  ;;  %v679_v29 = vld [vmem:[#allocation3 + $0x30] sm:$0xff]  ;;  %v685_v13 = vld [vmem:[#allocation3 + $0x58] sm:$0xff] }
  0x34   :  { %4845 = vmatpush3.msk.msra.mxu0 %vm119_vm0, %v4353_v12  ;;  %4841 = vmatprep.mubr.msk.f32.mxu0 %vm106_vm1, %v418_v18  ;;  %v5286_v28 = vpack.c.bf16 %v678_v27, %v677_v26  ;;  %v5290_v31 = vpack.c.bf16 %v680_v30, %v679_v29  ;;  %v673_v33 = vld [vmem:[#allocation3 + $0x8] sm:$0xff]  ;;  %v674_v2 = vld [vmem:[#allocation3 + $0x10] sm:$0xff]  ;;  %v687_v17 = vld [vmem:[#allocation3 + $0x60] sm:$0xff] }
  0x35   :  { %v5294_v34 = vpack.c.bf16 %v673_v33, %v672_v32  ;;  %v5298_v6 = vpack.c.bf16 %v675_v3, %v674_v2  ;;  %v683_v8 = vld [vmem:[#allocation3 + $0x48] sm:$0xff]  ;;  %v684_v12 = vld [vmem:[#allocation3 + $0x50] sm:$0xff]  ;;  %v692_v27 = vld [vmem:[#allocation3 + $0x80] sm:$0xff] }
  0x36   :  { %4826 = vmatmul.mubr.msk.f32.gmra.mrb[2].mxu1 %vm106_vm1, %v101_v19  ;;  %5287 = vmatprep.subr.bf16.mxu1 %v5286_v28  ;;  %v5302_v11 = vpack.c.bf16 %v683_v8, %v682_v7  ;;  %v5306_v15 = vpack.c.bf16 %v685_v13, %v684_v12  ;;  %v688_v18 = vld [vmem:[#allocation3 + $0x68] sm:$0xff]  ;;  %v694_v32 = vld [vmem:[#allocation3 + $0x90] sm:$0xff]  ;;  %v695_v33 = vld [vmem:[#allocation3 + $0x98] sm:$0xff] }
  0x37   :  { %4842 = vmatmul.mubr.msk.f32.gmra.mrb[2].mxu0 %vm106_vm1, %v419_v20  ;;  %5289 = vmatpush3.bf16.msra.mxu1 %v5286_v28  ;;  %v5310_v20 = vpack.c.bf16 %v688_v18, %v687_v17  ;;  %v693_v28 = vld [vmem:[#allocation3 + $0x88] sm:$0xff] }
  0x38   :  { %4846 = vmatprep.mubr.msk.f32.mxu0 %vm106_vm1, %v524_v21  ;;  %5291 = vmatprep.subr.bf16.mxu1 %v5290_v31  ;;  %v5318_v30 = vpack.c.bf16 %v693_v28, %v692_v27 }
  0x3b   :  { %4847 = vmatmul.mubr.msk.f32.vlgmr.msra.gmra.mrb[0].mxu0 %vm106_vm1, %v525_v22  ;;  %5293 = vmatpush3.bf16.msra.mxu1 %v5290_v31  ;;  %v689_v22 = vld [vmem:[#allocation3 + $0x70] sm:$0xff] }
  0x3c   :  { %4849 = vmatprep.mubr.msk.f32.mxu0 %vm106_vm1, %v526_v23  ;;  %5295 = vmatprep.subr.bf16.mxu1 %v5294_v34  ;;  %v690_v23 = vld [vmem:[#allocation3 + $0x78] sm:$0xff] }
  0x3d   :  { %v5314_v25 = vpack.c.bf16 %v690_v23, %v689_v22 }
  0x3f   :  { %4850 = vmatmul.mubr.msk.f32.gmra.mrb[2].mxu0 %vm106_vm1, %v527_v24 }
 0x105   :  { %v4824_v35 = vpop.f32.mrb[0].mxu1 }
 0x106   :  { %v289_v36 = vpop.f32.mrb[1].mxu1 }
 0x109   :  { %v4827_v37 = vpop.f32.mrb[2].mxu1 }
 0x10a   :  { %v299_v38 = vpop.f32.mrb[3].mxu1 }
 0x10e   :  { %v4848_v40 = vpop.f32.mrb[0].mxu0 }
 0x10f   :  { %v5534_v41 = vadd.f32 %v4848_v40, %v4824_v35  ;;  %v609_v42 = vpop.f32.mrb[1].mxu0  ;;  %v5322_v35 = vpack.c.bf16 %v695_v33, %v694_v32 }
 0x110   :  { %v5535_v44 = vadd.f32 %v609_v42, %v289_v36 }
 0x111   :  { %v639_v45 = vadd.f32 %v5534_v41, %v4379_v39 }
 0x112   :  { %v638_v47 = vadd.f32 %v5535_v44, %v4379_v39  ;;  %v4851_v48 = vpop.f32.mrb[2].mxu0  ;;  %v1260_v44 = vld [vmem:[#allocation6 + $0x28] sm:$0xff] }
 0x113   :  { %v650_v49 = vmul.f32 %v4380_v43, %v639_v45  ;;  %v5536_v50 = vadd.f32 %v4851_v48, %v4827_v37  ;;  %v619_v51 = vpop.f32.mrb[3].mxu0 }
 0x114   :  { %v649_v52 = vmul.f32 %v4380_v43, %v638_v47  ;;  %v5537_v53 = vadd.f32 %v619_v51, %v299_v38  ;;  %v1262_v47 = vld [vmem:[#allocation6 + $0x38] sm:$0xff] }
 0x115   :  { %v5968_v54 = vadd.f32 %v4381_v46, %v650_v49  ;;  %v641_v55 = vadd.f32 %v5536_v50, %v4379_v39  ;;  %v1254_v49 = vld [vmem:[#allocation6] sm:$0xff]  ;;  %v1255_v50 = vld [vmem:[#allocation6 + $0x8] sm:$0xff] }
 0x116   :  { %v5970_v56 = vadd.f32 %v4381_v46, %v649_v52  ;;  %v640_v57 = vadd.f32 %v5537_v53, %v4379_v39  ;;  %v5334_v51 = vpack.c.bf16 %v1255_v50, %v1254_v49  ;;  %v4402_v52 = vld [vmem:[%s6287_s6] ss:$0 sm:$0xff]  ;;  %v1276_v49 = vld [vmem:[#allocation6 + $0x90] sm:$0xff]  ;;  %v1277_v50 = vld [vmem:[#allocation6 + $0x98] sm:$0xff] }
 0x117   :  { %v665_v58 = vmax.f32 %v5968_v54, 0.0  ;;  %v652_v59 = vmul.f32 %v4380_v43, %v641_v55  ;;  %v4403_v55 = vld [vmem:[%s6288_s7] ss:$0 sm:$0xff] }
 0x118   :  { %v664_v60 = vmax.f32 %v5970_v56, 0.0  ;;  %v651_v61 = vmul.f32 %v4380_v43, %v640_v57  ;;  %v1259_v43 = vld [vmem:[#allocation6 + $0x20] sm:$0xff] }
 0x119   :  { %669 = vst.msk [vmem:[#allocation2 + $0x10] sm:$0xff] %vm79_vm2, %v665_v58  ;;  %v5977_v62 = vadd.f32 %v4381_v46, %v652_v59  ;;  %v5326_v45 = vpack.c.bf16 %v1260_v44, %v1259_v43  ;;  %v1274_v44 = vld [vmem:[#allocation6 + $0x80] sm:$0xff] }
 0x11a   :  { %668 = vst.msk [vmem:[#allocation2 + $0x8] sm:$0xff] %vm79_vm2, %v664_v60  ;;  %v5982_v63 = vadd.f32 %v4381_v46, %v651_v61  ;;  %v1261_v46 = vld [vmem:[#allocation6 + $0x30] sm:$0xff]  ;;  %v4404_v61 = vld [vmem:[%s6289_s8] ss:$0 sm:$0xff] }
 0x11b   :  { %v667_v0 = vmax.f32 %v5977_v62, 0.0  ;;  %5327 = vmatprep.subr.bf16.mxu0 %v5326_v45  ;;  %v5330_v48 = vpack.c.bf16 %v1262_v47, %v1261_v46  ;;  %v1843_v62 = vld [vmem:[#allocation3 + $0xb0] sm:$0xff] }
 0x11c   :  { %v666_v1 = vmax.f32 %v5982_v63, 0.0  ;;  %5329 = vmatpush3.bf16.msra.mxu0 %v5326_v45  ;;  %v1275_v45 = vld [vmem:[#allocation6 + $0x88] sm:$0xff]  ;;  %v1851_v63 = vld [vmem:[#allocation3 + $0xe0] sm:$0xff] }
 0x11d   :  { %671 = vst.msk [vmem:[#allocation2 + $0x30] sm:$0xff] %vm79_vm2, %v667_v0  ;;  %5331 = vmatprep.subr.bf16.mxu0 %v5330_v48  ;;  %v5358_v47 = vpack.c.bf16 %v1275_v45, %v1274_v44 }
 0x11e   :  { %670 = vst.msk [vmem:[#allocation2 + $0x28] sm:$0xff] %vm79_vm2, %v666_v1 }
 0x120   :  { %v900_v26 = vld [vmem:[#allocation2 + $0x10] sm:$0xff]  ;;  %5333 = vmatpush3.bf16.msra.mxu0 %v5330_v48 }
 0x121   :  { %v701_v4 = vld [vmem:[#allocation2 + $0x7] sm:$0xff]  ;;  %v702_v5 = vld [vmem:[#allocation2 + $0xf] sm:$0xff]  ;;  %5335 = vmatprep.subr.bf16.mxu0 %v5334_v51 }
 0x122   :  { %4860 = vmatprep.mubr.msk.f32.mxu1 %vm79_vm2, %v701_v4  ;;  %v697_v14 = vld [vmem:[#allocation2 + $0x6] sm:$0xff]  ;;  %v698_v16 = vld [vmem:[#allocation2 + $0xe] sm:$0xff] }
 0x123   :  { %4861 = vmatmul.mubr.msk.f32.vlgmr.msra.gmra.mrb[4].mxu1 %vm79_vm2, %v702_v5  ;;  %v899_v24 = vld [vmem:[#allocation2 + $0x8] sm:$0xff]  ;;  %v1005_v36 = vld [vmem:[#allocation2 + $0x11] sm:$0xff] }
 0x124   :  { %5297 = vmatpush3.bf16.msra.mxu1 %v5294_v34  ;;  %v902_v31 = vld [vmem:[#allocation2 + $0x30] sm:$0xff] }
 0x125   :  { %v703_v9 = vld [vmem:[#allocation2 + $0x27] sm:$0xff]  ;;  %v704_v10 = vld [vmem:[#allocation2 + $0x2f] sm:$0xff]  ;;  %5299 = vmatprep.subr.bf16.mxu1 %v5298_v6 }
 0x126   :  { %4863 = vmatprep.mubr.msk.f32.mxu1 %vm79_vm2, %v703_v9  ;;  %v699_v19 = vld [vmem:[#allocation2 + $0x26] sm:$0xff]  ;;  %v700_v21 = vld [vmem:[#allocation2 + $0x2e] sm:$0xff] }
 0x127   :  { %4864 = vmatmul.mubr.msk.f32.gmra.mrb[6].mxu1 %vm79_vm2, %v704_v10  ;;  %v901_v29 = vld [vmem:[#allocation2 + $0x28] sm:$0xff]  ;;  %v1007_v38 = vld [vmem:[#allocation2 + $0x31] sm:$0xff] }
 0x128   :  { %5301 = vmatpush3.bf16.msra.mxu1 %v5298_v6  ;;  %4874 = vmatprep.mubr.msk.f32.mxu1 %vm79_vm2, %v697_v14  ;;  %v1004_v34 = vld [vmem:[#allocation2 + $0x9] sm:$0xff]  ;;  %v1110_v40 = vld [vmem:[#allocation2 + $0x12] sm:$0xff] }
 0x129   :  { %5303 = vmatprep.subr.bf16.mxu1 %v5302_v11  ;;  %v1006_v37 = vld [vmem:[#allocation2 + $0x29] sm:$0xff]  ;;  %v1112_v42 = vld [vmem:[#allocation2 + $0x32] sm:$0xff] }
 0x12a   :  { %v1109_v39 = vld [vmem:[#allocation2 + $0xa] sm:$0xff] }
 0x12b   :  { %4875 = vmatmul.mubr.msk.f32.vlgmr.msra.gmra.mrb[4].mxu1 %vm79_vm2, %v698_v16  ;;  %v1111_v41 = vld [vmem:[#allocation2 + $0x2a] sm:$0xff] }
 0x12c   :  { %4877 = vmatprep.mubr.msk.f32.mxu1 %vm79_vm2, %v699_v19  ;;  %5305 = vmatpush3.bf16.msra.mxu1 %v5302_v11  ;;  %v1256_v19 = vld [vmem:[#allocation6 + $0x10] sm:$0xff] }
 0x12d   :  { %5307 = vmatprep.subr.bf16.mxu1 %v5306_v15 }
 0x12f   :  { %4878 = vmatmul.mubr.msk.f32.gmra.mrb[6].mxu1 %vm79_vm2, %v700_v21 }
 0x130   :  { %5309 = vmatpush3.bf16.msra.mxu1 %v5306_v15  ;;  %4888 = vmatprep.mubr.msk.f32.mxu1 %vm79_vm2, %v899_v24  ;;  %v1264_v24 = vld [vmem:[#allocation6 + $0x40] sm:$0xff] }
 0x131   :  { %5311 = vmatprep.subr.bf16.mxu1 %v5310_v20 }
 0x133   :  { %4889 = vmatmul.mubr.msk.f32.vlgmr.msra.gmra.mrb[4].mxu1 %vm79_vm2, %v900_v26 }
 0x134   :  { %4891 = vmatprep.mubr.msk.f32.mxu1 %vm79_vm2, %v901_v29  ;;  %5313 = vmatpush3.bf16.msra.mxu1 %v5310_v20  ;;  %v1257_v20 = vld [vmem:[#allocation6 + $0x18] sm:$0xff]  ;;  %v1266_v29 = vld [vmem:[#allocation6 + $0x50] sm:$0xff] }
 0x135   :  { %5315 = vmatprep.subr.bf16.mxu1 %v5314_v25  ;;  %v5338_v23 = vpack.c.bf16 %v1257_v20, %v1256_v19 }
 0x137   :  { %4892 = vmatmul.mubr.msk.f32.gmra.mrb[6].mxu1 %vm79_vm2, %v902_v31 }
 0x138   :  { %5317 = vmatpush3.bf16.msra.mxu1 %v5314_v25  ;;  %4902 = vmatprep.mubr.msk.f32.mxu1 %vm79_vm2, %v1004_v34  ;;  %v1265_v25 = vld [vmem:[#allocation6 + $0x48] sm:$0xff]  ;;  %v1269_v34 = vld [vmem:[#allocation6 + $0x60] sm:$0xff] }
 0x139   :  { %5319 = vmatprep.subr.bf16.mxu1 %v5318_v30  ;;  %v5342_v28 = vpack.c.bf16 %v1265_v25, %v1264_v24 }
 0x13b   :  { %4903 = vmatmul.mubr.msk.f32.vlgmr.msra.gmra.mrb[4].mxu1 %vm79_vm2, %v1005_v36 }
 0x13c   :  { %4905 = vmatprep.mubr.msk.f32.mxu1 %vm79_vm2, %v1006_v37  ;;  %5321 = vmatpush3.bf16.msra.mxu1 %v5318_v30  ;;  %v1267_v30 = vld [vmem:[#allocation6 + $0x58] sm:$0xff] }
 0x13d   :  { %5323 = vmatprep.subr.bf16.mxu1 %v5322_v35  ;;  %v5346_v32 = vpack.c.bf16 %v1267_v30, %v1266_v29 }
 0x13f   :  { %4906 = vmatmul.mubr.msk.f32.gmra.mrb[6].mxu1 %vm79_vm2, %v1007_v38 }
 0x140   :  { %5325 = vmatpush3.bf16.msra.mxu1 %v5322_v35  ;;  %4916 = vmatprep.mubr.msk.f32.mxu1 %vm79_vm2, %v1109_v39  ;;  %v1270_v35 = vld [vmem:[#allocation6 + $0x68] sm:$0xff]  ;;  %v1271_v39 = vld [vmem:[#allocation6 + $0x70] sm:$0xff] }
 0x141   :  { %v5350_v37 = vpack.c.bf16 %v1270_v35, %v1269_v34 }
 0x143   :  { %4917 = vmatmul.mubr.msk.f32.vlgmr.msra.gmra.mrb[4].mxu1 %vm79_vm2, %v1110_v40  ;;  %v1272_v40 = vld [vmem:[#allocation6 + $0x78] sm:$0xff] }
 0x144   :  { %4919 = vmatprep.mubr.msk.f32.mxu1 %vm79_vm2, %v1111_v41 }
 0x147   :  { %4920 = vmatmul.mubr.msk.f32.gmra.mrb[6].mxu1 %vm79_vm2, %v1112_v42  ;;  %v5354_v42 = vpack.c.bf16 %v1272_v40, %v1271_v39 }
 0x216   :  { %v4918_v53 = vpop.f32.mrb[4].mxu1 }
 0x217   :  { %v1221_v57 = vadd.f32 %v4918_v53, %v4402_v52  ;;  %v1191_v59 = vpop.f32.mrb[5].mxu1 }
 0x218   :  { %v1220_v2 = vadd.f32 %v4402_v52, %v1191_v59 }
 0x219   :  { %v1232_v3 = vmul.f32 %v4403_v55, %v1221_v57 }
 0x21a   :  { %v1231_v4 = vmul.f32 %v4403_v55, %v1220_v2  ;;  %v4921_v5 = vpop.f32.mrb[6].mxu1 }
 0x21b   :  { %v1243_v6 = vadd.f32 %v4404_v61, %v1232_v3  ;;  %v1223_v7 = vadd.f32 %v4921_v5, %v4402_v52  ;;  %v1201_v8 = vpop.f32.mrb[7].mxu1  ;;  %v1847_v5 = vld [vmem:[#allocation3 + $0xc8] sm:$0xff] }
 0x21c   :  { %v1242_v9 = vadd.f32 %v4404_v61, %v1231_v4  ;;  %v1222_v10 = vadd.f32 %v4402_v52, %v1201_v8  ;;  %v5362_v52 = vpack.c.bf16 %v1277_v50, %v1276_v49  ;;  %v1846_v4 = vld [vmem:[#allocation3 + $0xc0] sm:$0xff]  ;;  %v1849_v8 = vld [vmem:[#allocation3 + $0xd8] sm:$0xff] }
 0x21d   :  { %v1247_v11 = vmax.f32 %v1243_v6, 0.0  ;;  %v1234_v12 = vmul.f32 %v4403_v55, %v1223_v7  ;;  %v5366_v6 = vpack.c.bf16 %v1847_v5, %v1846_v4  ;;  %v1848_v7 = vld [vmem:[#allocation3 + $0xd0] sm:$0xff] }
 0x21e   :  { %v1246_v13 = vmax.f32 %v1242_v9, 0.0  ;;  %v1233_v14 = vmul.f32 %v4403_v55, %v1222_v10  ;;  %v5370_v9 = vpack.c.bf16 %v1849_v8, %v1848_v7  ;;  %v1841_v10 = vld [vmem:[#allocation3 + $0xa0] sm:$0xff]  ;;  %v1864_v7 = vld [vmem:[#allocation3 + $0x138] sm:$0xff] }
 0x21f   :  { %1251 = vst.msk [vmem:[#allocation2 + $0x10] sm:$0xff] %vm79_vm2, %v1247_v11  ;;  %v1245_v15 = vadd.f32 %v4404_v61, %v1234_v12  ;;  %5367 = vmatprep.subr.bf16.mxu1 %v5366_v6  ;;  %v1842_v11 = vld [vmem:[#allocation3 + $0xa8] sm:$0xff] }
 0x220   :  { %1250 = vst.msk [vmem:[#allocation2 + $0x8] sm:$0xff] %vm79_vm2, %v1246_v13  ;;  %v1244_v16 = vadd.f32 %v4404_v61, %v1233_v14  ;;  %5369 = vmatpush3.bf16.msra.mxu1 %v5366_v6  ;;  %v5374_v12 = vpack.c.bf16 %v1842_v11, %v1841_v10  ;;  %v4425_v13 = vld [vmem:[%s6291_s10] ss:$0 sm:$0xff]  ;;  %v1863_v6 = vld [vmem:[#allocation3 + $0x130] sm:$0xff] }
 0x221   :  { %v1249_v17 = vmax.f32 %v1245_v15, 0.0  ;;  %5371 = vmatprep.subr.bf16.mxu1 %v5370_v9  ;;  %v4426_v15 = vld [vmem:[%s6292_s11] ss:$0 sm:$0xff] }
 0x222   :  { %v1248_v18 = vmax.f32 %v1244_v16, 0.0 }
 0x223   :  { %1253 = vst.msk [vmem:[#allocation2 + $0x30] sm:$0xff] %vm79_vm2, %v1249_v17 }
 0x224   :  { %1252 = vst.msk [vmem:[#allocation2 + $0x28] sm:$0xff] %vm79_vm2, %v1248_v18  ;;  %5373 = vmatpush3.bf16.msra.mxu1 %v5370_v9  ;;  %v4427_v18 = vld [vmem:[%s6293_s12] ss:$0 sm:$0xff]  ;;  %v5402_v9 = vpack.c.bf16 %v1864_v7, %v1863_v6 }
 0x225   :  { %5375 = vmatprep.subr.bf16.mxu1 %v5374_v12 }
 0x226   :  { %v1482_v43 = vld [vmem:[#allocation2 + $0x10] sm:$0xff] }
 0x227   :  { %v1283_v21 = vld [vmem:[#allocation2 + $0x7] sm:$0xff]  ;;  %v1284_v22 = vld [vmem:[#allocation2 + $0xf] sm:$0xff] }
 0x228   :  { %4930 = vmatprep.mubr.msk.f32.mxu0 %vm79_vm2, %v1283_v21  ;;  %v1279_v31 = vld [vmem:[#allocation2 + $0x6] sm:$0xff]  ;;  %v1280_v33 = vld [vmem:[#allocation2 + $0xe] sm:$0xff] }
 0x229   :  { %4931 = vmatmul.mubr.msk.f32.vlgmr.msra.gmra.mrb[4].mxu0 %vm79_vm2, %v1284_v22  ;;  %v1481_v41 = vld [vmem:[#allocation2 + $0x8] sm:$0xff]  ;;  %v1587_v53 = vld [vmem:[#allocation2 + $0x11] sm:$0xff] }
 0x22a   :  { %5337 = vmatpush3.bf16.msra.mxu0 %v5334_v51  ;;  %v1484_v48 = vld [vmem:[#allocation2 + $0x30] sm:$0xff] }
 0x22b   :  { %v1285_v26 = vld [vmem:[#allocation2 + $0x27] sm:$0xff]  ;;  %v1286_v27 = vld [vmem:[#allocation2 + $0x2f] sm:$0xff]  ;;  %5339 = vmatprep.subr.bf16.mxu0 %v5338_v23 }
 0x22c   :  { %4933 = vmatprep.mubr.msk.f32.mxu0 %vm79_vm2, %v1285_v26  ;;  %v1281_v36 = vld [vmem:[#allocation2 + $0x26] sm:$0xff]  ;;  %v1282_v38 = vld [vmem:[#allocation2 + $0x2e] sm:$0xff] }
 0x22d   :  { %4934 = vmatmul.mubr.msk.f32.gmra.mrb[6].mxu0 %vm79_vm2, %v1286_v27  ;;  %v1483_v46 = vld [vmem:[#allocation2 + $0x28] sm:$0xff]  ;;  %v1589_v57 = vld [vmem:[#allocation2 + $0x31] sm:$0xff] }
 0x22e   :  { %5341 = vmatpush3.bf16.msra.mxu0 %v5338_v23  ;;  %4944 = vmatprep.mubr.msk.f32.mxu0 %vm79_vm2, %v1279_v31  ;;  %v1586_v51 = vld [vmem:[#allocation2 + $0x9] sm:$0xff]  ;;  %v1692_v61 = vld [vmem:[#allocation2 + $0x12] sm:$0xff] }
 0x22f   :  { %5343 = vmatprep.subr.bf16.mxu0 %v5342_v28  ;;  %v1588_v55 = vld [vmem:[#allocation2 + $0x29] sm:$0xff]  ;;  %v1694_v3 = vld [vmem:[#allocation2 + $0x32] sm:$0xff] }
 0x230   :  { %v1691_v59 = vld [vmem:[#allocation2 + $0xa] sm:$0xff] }
 0x231   :  { %4945 = vmatmul.mubr.msk.f32.vlgmr.msra.gmra.mrb[4].mxu0 %vm79_vm2, %v1280_v33  ;;  %v1693_v2 = vld [vmem:[#allocation2 + $0x2a] sm:$0xff] }
 0x232   :  { %4947 = vmatprep.mubr.msk.f32.mxu0 %vm79_vm2, %v1281_v36  ;;  %5345 = vmatpush3.bf16.msra.mxu0 %v5342_v28 }
 0x233   :  { %5347 = vmatprep.subr.bf16.mxu0 %v5346_v32 }
 0x235   :  { %4948 = vmatmul.mubr.msk.f32.gmra.mrb[6].mxu0 %vm79_vm2, %v1282_v38 }
 0x236   :  { %5349 = vmatpush3.bf16.msra.mxu0 %v5346_v32  ;;  %4958 = vmatprep.mubr.msk.f32.mxu0 %vm79_vm2, %v1481_v41 }
 0x237   :  { %5351 = vmatprep.subr.bf16.mxu0 %v5350_v37 }
 0x239   :  { %4959 = vmatmul.mubr.msk.f32.vlgmr.msra.gmra.mrb[4].mxu0 %vm79_vm2, %v1482_v43  ;;  %v1854_v43 = vld [vmem:[#allocation3 + $0xf8] sm:$0xff] }
 0x23a   :  { %4961 = vmatprep.mubr.msk.f32.mxu0 %vm79_vm2, %v1483_v46  ;;  %5353 = vmatpush3.bf16.msra.mxu0 %v5350_v37 }
 0x23b   :  { %5355 = vmatprep.subr.bf16.mxu0 %v5354_v42 }
 0x23d   :  { %4962 = vmatmul.mubr.msk.f32.gmra.mrb[6].mxu0 %vm79_vm2, %v1484_v48  ;;  %v1857_v48 = vld [vmem:[#allocation3 + $0x108] sm:$0xff] }
 0x23e   :  { %5357 = vmatpush3.bf16.msra.mxu0 %v5354_v42  ;;  %4972 = vmatprep.mubr.msk.f32.mxu0 %vm79_vm2, %v1586_v51  ;;  %v1853_v42 = vld [vmem:[#allocation3 + $0xf0] sm:$0xff] }
 0x23f   :  { %5359 = vmatprep.subr.bf16.mxu0 %v5358_v47  ;;  %v5386_v45 = vpack.c.bf16 %v1854_v43, %v1853_v42 }
 0x241   :  { %4973 = vmatmul.mubr.msk.f32.vlgmr.msra.gmra.mrb[4].mxu0 %vm79_vm2, %v1587_v53  ;;  %v1859_v53 = vld [vmem:[#allocation3 + $0x118] sm:$0xff] }
 0x242   :  { %4975 = vmatprep.mubr.msk.f32.mxu0 %vm79_vm2, %v1588_v55  ;;  %5361 = vmatpush3.bf16.msra.mxu0 %v5358_v47  ;;  %v1856_v47 = vld [vmem:[#allocation3 + $0x100] sm:$0xff] }
 0x243   :  { %5363 = vmatprep.subr.bf16.mxu0 %v5362_v52  ;;  %v5390_v50 = vpack.c.bf16 %v1857_v48, %v1856_v47 }
 0x245   :  { %4976 = vmatmul.mubr.msk.f32.gmra.mrb[6].mxu0 %vm79_vm2, %v1589_v57 }
 0x246   :  { %5365 = vmatpush3.bf16.msra.mxu0 %v5362_v52  ;;  %4986 = vmatprep.mubr.msk.f32.mxu0 %vm79_vm2, %v1691_v59  ;;  %v1858_v52 = vld [vmem:[#allocation3 + $0x110] sm:$0xff] }
 0x247   :  { %v5394_v57 = vpack.c.bf16 %v1859_v53, %v1858_v52 }
 0x249   :  { %4987 = vmatmul.mubr.msk.f32.vlgmr.msra.gmra.mrb[4].mxu0 %vm79_vm2, %v1692_v61  ;;  %v1861_v61 = vld [vmem:[#allocation3 + $0x120] sm:$0xff] }
 0x24a   :  { %4989 = vmatprep.mubr.msk.f32.mxu0 %vm79_vm2, %v1693_v2  ;;  %v1862_v2 = vld [vmem:[#allocation3 + $0x128] sm:$0xff] }
 0x24b   :  { %v5398_v4 = vpack.c.bf16 %v1862_v2, %v1861_v61 }
 0x24d   :  { %4990 = vmatmul.mubr.msk.f32.gmra.mrb[6].mxu0 %vm79_vm2, %v1694_v3 }
 0x31c   :  { %v4988_v14 = vpop.f32.mrb[4].mxu0 }
 0x31d   :  { %v1803_v16 = vadd.f32 %v4988_v14, %v4425_v13  ;;  %v1773_v17 = vpop.f32.mrb[5].mxu0 }
 0x31e   :  { %v1802_v19 = vadd.f32 %v4425_v13, %v1773_v17  ;;  %v2432_v17 = vld [vmem:[#allocation6 + $0xc0] sm:$0xff] }
 0x31f   :  { %v1814_v20 = vmul.f32 %v4426_v15, %v1803_v16 }
 0x320   :  { %v1813_v21 = vmul.f32 %v4426_v15, %v1802_v19  ;;  %v4991_v22 = vpop.f32.mrb[6].mxu0 }
 0x321   :  { %v1825_v23 = vadd.f32 %v4427_v18, %v1814_v20  ;;  %v1805_v24 = vadd.f32 %v4991_v22, %v4425_v13  ;;  %v1783_v25 = vpop.f32.mrb[7].mxu0  ;;  %v2434_v20 = vld [vmem:[#allocation6 + $0xd0] sm:$0xff] }
 0x322   :  { %v1824_v26 = vadd.f32 %v4427_v18, %v1813_v21  ;;  %v1804_v27 = vadd.f32 %v4425_v13, %v1783_v25  ;;  %v2435_v21 = vld [vmem:[#allocation6 + $0xd8] sm:$0xff] }
 0x323   :  { %v6056_v28 = vadd.f32 %v1825_v23, %v665_v58  ;;  %v1816_v29 = vmul.f32 %v4426_v15, %v1805_v24  ;;  %v5410_v22 = vpack.c.bf16 %v2435_v21, %v2434_v20  ;;  %v2427_v23 = vld [vmem:[#allocation6 + $0xa0] sm:$0xff]  ;;  %v2428_v24 = vld [vmem:[#allocation6 + $0xa8] sm:$0xff] }
 0x324   :  { %v6060_v30 = vadd.f32 %v1824_v26, %v664_v60  ;;  %v1815_v31 = vmul.f32 %v4426_v15, %v1804_v27  ;;  %v5414_v25 = vpack.c.bf16 %v2428_v24, %v2427_v23  ;;  %v4449_v26 = vld [vmem:[%s6287_s6 + $0x1] ss:$0 sm:$0xff]  ;;  %v2449_v23 = vld [vmem:[#allocation6 + $0x130] sm:$0xff]  ;;  %v2450_v24 = vld [vmem:[#allocation6 + $0x138] sm:$0xff] }
 0x325   :  { %v1833_v32 = vmax.f32 %v6056_v28, 0.0  ;;  %v1827_v33 = vadd.f32 %v4427_v18, %v1816_v29  ;;  %v4451_v29 = vld [vmem:[%s6288_s7 + $0x1] ss:$0 sm:$0xff] }
 0x326   :  { %v1832_v34 = vmax.f32 %v6060_v30, 0.0  ;;  %v1826_v35 = vadd.f32 %v4427_v18, %v1815_v31  ;;  %v2433_v18 = vld [vmem:[#allocation6 + $0xc8] sm:$0xff] }
 0x327   :  { %1837 = vst.msk [vmem:[#allocation2 + $0x10] sm:$0xff] %vm79_vm2, %v1833_v32  ;;  %v6069_v54 = vadd.f32 %v1827_v33, %v667_v0  ;;  %v1844_v0 = vld [vmem:[#allocation3 + $0xb8] sm:$0xff]  ;;  %v5406_v19 = vpack.c.bf16 %v2433_v18, %v2432_v17  ;;  %v2447_v18 = vld [vmem:[#allocation6 + $0x120] sm:$0xff] }
 0x328   :  { %1836 = vst.msk [vmem:[#allocation2 + $0x8] sm:$0xff] %vm79_vm2, %v1832_v34  ;;  %v6076_v56 = vadd.f32 %v1826_v35, %v666_v1  ;;  %v5378_v38 = vpack.c.bf16 %v1844_v0, %v1843_v62  ;;  %v1852_v1 = vld [vmem:[#allocation3 + $0xe8] sm:$0xff]  ;;  %v4453_v35 = vld [vmem:[%s6289_s8 + $0x1] ss:$0 sm:$0xff] }
 0x329   :  { %v1835_v58 = vmax.f32 %v6069_v54, 0.0  ;;  %v5382_v41 = vpack.c.bf16 %v1852_v1, %v1851_v63  ;;  %5407 = vmatprep.subr.bf16.mxu0 %v5406_v19  ;;  %v3019_v54 = vld [vmem:[#allocation3 + $0x150] sm:$0xff] }
 0x32a   :  { %v1834_v60 = vmax.f32 %v6076_v56, 0.0  ;;  %5409 = vmatpush3.bf16.msra.mxu0 %v5406_v19  ;;  %v2448_v19 = vld [vmem:[#allocation6 + $0x128] sm:$0xff]  ;;  %v3027_v56 = vld [vmem:[#allocation3 + $0x180] sm:$0xff] }
 0x32b   :  { %1839 = vst.msk [vmem:[#allocation2 + $0x30] sm:$0xff] %vm79_vm2, %v1835_v58  ;;  %5411 = vmatprep.subr.bf16.mxu0 %v5410_v22  ;;  %v5438_v21 = vpack.c.bf16 %v2448_v19, %v2447_v18 }
 0x32c   :  { %1838 = vst.msk [vmem:[#allocation2 + $0x28] sm:$0xff] %vm79_vm2, %v1834_v60 }
 0x32e   :  { %v2070_v59 = vld [vmem:[#allocation2 + $0x10] sm:$0xff]  ;;  %5413 = vmatpush3.bf16.msra.mxu0 %v5410_v22 }
 0x32f   :  { %v1871_v36 = vld [vmem:[#allocation2 + $0x7] sm:$0xff]  ;;  %v1872_v37 = vld [vmem:[#allocation2 + $0xf] sm:$0xff]  ;;  %5415 = vmatprep.subr.bf16.mxu0 %v5414_v25 }
 0x330   :  { %5000 = vmatprep.mubr.msk.f32.mxu1 %vm79_vm2, %v1871_v36  ;;  %v1867_v44 = vld [vmem:[#allocation2 + $0x6] sm:$0xff]  ;;  %v1868_v46 = vld [vmem:[#allocation2 + $0xe] sm:$0xff] }
 0x331   :  { %5001 = vmatmul.mubr.msk.f32.vlgmr.msra.gmra.mrb[8].mxu1 %vm79_vm2, %v1872_v37  ;;  %v2069_v55 = vld [vmem:[#allocation2 + $0x8] sm:$0xff]  ;;  %v2175_v10 = vld [vmem:[#allocation2 + $0x11] sm:$0xff] }
 0x332   :  { %5377 = vmatpush3.bf16.msra.mxu1 %v5374_v12  ;;  %v2072_v5 = vld [vmem:[#allocation2 + $0x30] sm:$0xff] }
 0x333   :  { %v1873_v39 = vld [vmem:[#allocation2 + $0x27] sm:$0xff]  ;;  %v1874_v40 = vld [vmem:[#allocation2 + $0x2f] sm:$0xff]  ;;  %5379 = vmatprep.subr.bf16.mxu1 %v5378_v38 }
 0x334   :  { %5003 = vmatprep.mubr.msk.f32.mxu1 %vm79_vm2, %v1873_v39  ;;  %v1869_v49 = vld [vmem:[#allocation2 + $0x26] sm:$0xff]  ;;  %v1870_v51 = vld [vmem:[#allocation2 + $0x2e] sm:$0xff] }
 0x335   :  { %5004 = vmatmul.mubr.msk.f32.gmra.mrb[10].mxu1 %vm79_vm2, %v1874_v40  ;;  %v2071_v3 = vld [vmem:[#allocation2 + $0x28] sm:$0xff]  ;;  %v2177_v12 = vld [vmem:[#allocation2 + $0x31] sm:$0xff] }
 0x336   :  { %5381 = vmatpush3.bf16.msra.mxu1 %v5378_v38  ;;  %5014 = vmatprep.mubr.msk.f32.mxu1 %vm79_vm2, %v1867_v44  ;;  %v2174_v8 = vld [vmem:[#allocation2 + $0x9] sm:$0xff]  ;;  %v2280_v14 = vld [vmem:[#allocation2 + $0x12] sm:$0xff] }
 0x337   :  { %5383 = vmatprep.subr.bf16.mxu1 %v5382_v41  ;;  %v2176_v11 = vld [vmem:[#allocation2 + $0x29] sm:$0xff]  ;;  %v2282_v16 = vld [vmem:[#allocation2 + $0x32] sm:$0xff] }
 0x338   :  { %v2279_v13 = vld [vmem:[#allocation2 + $0xa] sm:$0xff] }
 0x339   :  { %5015 = vmatmul.mubr.msk.f32.vlgmr.msra.gmra.mrb[8].mxu1 %vm79_vm2, %v1868_v46  ;;  %v2281_v15 = vld [vmem:[#allocation2 + $0x2a] sm:$0xff] }
 0x33a   :  { %5017 = vmatprep.mubr.msk.f32.mxu1 %vm79_vm2, %v1869_v49  ;;  %5385 = vmatpush3.bf16.msra.mxu1 %v5382_v41  ;;  %v2429_v49 = vld [vmem:[#allocation6 + $0xb0] sm:$0xff] }
 0x33b   :  { %5387 = vmatprep.subr.bf16.mxu1 %v5386_v45 }
 0x33d   :  { %5018 = vmatmul.mubr.msk.f32.gmra.mrb[10].mxu1 %vm79_vm2, %v1870_v51 }
 0x33e   :  { %5389 = vmatpush3.bf16.msra.mxu1 %v5386_v45  ;;  %5028 = vmatprep.mubr.msk.f32.mxu1 %vm79_vm2, %v2069_v55  ;;  %v2437_v55 = vld [vmem:[#allocation6 + $0xe0] sm:$0xff] }
 0x33f   :  { %5391 = vmatprep.subr.bf16.mxu1 %v5390_v50 }
 0x341   :  { %5029 = vmatmul.mubr.msk.f32.vlgmr.msra.gmra.mrb[8].mxu1 %vm79_vm2, %v2070_v59 }
 0x342   :  { %5031 = vmatprep.mubr.msk.f32.mxu1 %vm79_vm2, %v2071_v3  ;;  %5393 = vmatpush3.bf16.msra.mxu1 %v5390_v50  ;;  %v2430_v50 = vld [vmem:[#allocation6 + $0xb8] sm:$0xff]  ;;  %v2439_v3 = vld [vmem:[#allocation6 + $0xf0] sm:$0xff] }
 0x343   :  { %5395 = vmatprep.subr.bf16.mxu1 %v5394_v57  ;;  %v5418_v53 = vpack.c.bf16 %v2430_v50, %v2429_v49 }
 0x345   :  { %5032 = vmatmul.mubr.msk.f32.gmra.mrb[10].mxu1 %vm79_vm2, %v2072_v5 }
 0x346   :  { %5397 = vmatpush3.bf16.msra.mxu1 %v5394_v57  ;;  %5042 = vmatprep.mubr.msk.f32.mxu1 %vm79_vm2, %v2174_v8  ;;  %v2438_v57 = vld [vmem:[#allocation6 + $0xe8] sm:$0xff]  ;;  %v2442_v8 = vld [vmem:[#allocation6 + $0x100] sm:$0xff] }
 0x347   :  { %5399 = vmatprep.subr.bf16.mxu1 %v5398_v4  ;;  %v5422_v2 = vpack.c.bf16 %v2438_v57, %v2437_v55 }
 0x349   :  { %5043 = vmatmul.mubr.msk.f32.vlgmr.msra.gmra.mrb[8].mxu1 %vm79_vm2, %v2175_v10 }
 0x34a   :  { %5045 = vmatprep.mubr.msk.f32.mxu1 %vm79_vm2, %v2176_v11  ;;  %5401 = vmatpush3.bf16.msra.mxu1 %v5398_v4  ;;  %v2440_v4 = vld [vmem:[#allocation6 + $0xf8] sm:$0xff] }
 0x34b   :  { %5403 = vmatprep.subr.bf16.mxu1 %v5402_v9  ;;  %v5426_v6 = vpack.c.bf16 %v2440_v4, %v2439_v3 }
 0x34d   :  { %5046 = vmatmul.mubr.msk.f32.gmra.mrb[10].mxu1 %vm79_vm2, %v2177_v12 }
 0x34e   :  { %5405 = vmatpush3.bf16.msra.mxu1 %v5402_v9  ;;  %5056 = vmatprep.mubr.msk.f32.mxu1 %vm79_vm2, %v2279_v13  ;;  %v2443_v9 = vld [vmem:[#allocation6 + $0x108] sm:$0xff]  ;;  %v2444_v13 = vld [vmem:[#allocation6 + $0x110] sm:$0xff] }
 0x34f   :  { %v5430_v11 = vpack.c.bf16 %v2443_v9, %v2442_v8 }
 0x351   :  { %5057 = vmatmul.mubr.msk.f32.vlgmr.msra.gmra.mrb[8].mxu1 %vm79_vm2, %v2280_v14  ;;  %v2445_v14 = vld [vmem:[#allocation6 + $0x118] sm:$0xff] }
 0x352   :  { %5059 = vmatprep.mubr.msk.f32.mxu1 %vm79_vm2, %v2281_v15 }
 0x355   :  { %5060 = vmatmul.mubr.msk.f32.gmra.mrb[10].mxu1 %vm79_vm2, %v2282_v16  ;;  %v5434_v16 = vpack.c.bf16 %v2445_v14, %v2444_v13 }
 0x424   :  { %v5058_v27 = vpop.f32.mrb[8].mxu1 }
 0x425   :  { %v2391_v31 = vadd.f32 %v5058_v27, %v4449_v26  ;;  %v2361_v33 = vpop.f32.mrb[9].mxu1 }
 0x426   :  { %v2390_v62 = vadd.f32 %v4449_v26, %v2361_v33 }
 0x427   :  { %v2403_v0 = vmul.f32 %v4451_v29, %v2391_v31 }
 0x428   :  { %v2402_v36 = vmul.f32 %v4451_v29, %v2390_v62  ;;  %v5061_v37 = vpop.f32.mrb[10].mxu1 }
 0x429   :  { %v2415_v38 = vadd.f32 %v4453_v35, %v2403_v0  ;;  %v2393_v63 = vadd.f32 %v5061_v37, %v4449_v26  ;;  %v2371_v1 = vpop.f32.mrb[11].mxu1  ;;  %v3023_v37 = vld [vmem:[#allocation3 + $0x168] sm:$0xff] }
 0x42a   :  { %v2414_v39 = vadd.f32 %v4453_v35, %v2402_v36  ;;  %v2392_v40 = vadd.f32 %v4449_v26, %v2371_v1  ;;  %v5442_v26 = vpack.c.bf16 %v2450_v24, %v2449_v23  ;;  %v3022_v36 = vld [vmem:[#allocation3 + $0x160] sm:$0xff]  ;;  %v3025_v1 = vld [vmem:[#allocation3 + $0x178] sm:$0xff] }
 0x42b   :  { %v2419_v41 = vmax.f32 %v2415_v38, 0.0  ;;  %v2405_v42 = vmul.f32 %v4451_v29, %v2393_v63  ;;  %v5446_v38 = vpack.c.bf16 %v3023_v37, %v3022_v36  ;;  %v3024_v63 = vld [vmem:[#allocation3 + $0x170] sm:$0xff] }
 0x42c   :  { %v2418_v43 = vmax.f32 %v2414_v39, 0.0  ;;  %v2404_v44 = vmul.f32 %v4451_v29, %v2392_v40  ;;  %v5450_v39 = vpack.c.bf16 %v3025_v1, %v3024_v63  ;;  %v3017_v40 = vld [vmem:[#allocation3 + $0x140] sm:$0xff]  ;;  %v3040_v63 = vld [vmem:[#allocation3 + $0x1d8] sm:$0xff] }
 0x42d   :  { %2423 = vst.msk [vmem:[#allocation2 + $0x10] sm:$0xff] %vm79_vm2, %v2419_v41  ;;  %v2417_v45 = vadd.f32 %v4453_v35, %v2405_v42  ;;  %5447 = vmatprep.subr.bf16.mxu1 %v5446_v38  ;;  %v3018_v41 = vld [vmem:[#allocation3 + $0x148] sm:$0xff] }
 0x42e   :  { %2422 = vst.msk [vmem:[#allocation2 + $0x8] sm:$0xff] %vm79_vm2, %v2418_v43  ;;  %v2416_v46 = vadd.f32 %v4453_v35, %v2404_v44  ;;  %5449 = vmatpush3.bf16.msra.mxu1 %v5446_v38  ;;  %v5454_v42 = vpack.c.bf16 %v3018_v41, %v3017_v40  ;;  %v4475_v43 = vld [vmem:[%s6291_s10 + $0x1] ss:$0 sm:$0xff]  ;;  %v3039_v38 = vld [vmem:[#allocation3 + $0x1d0] sm:$0xff] }
 0x42f   :  { %v2421_v47 = vmax.f32 %v2417_v45, 0.0  ;;  %5451 = vmatprep.subr.bf16.mxu1 %v5450_v39  ;;  %v4477_v45 = vld [vmem:[%s6292_s11 + $0x1] ss:$0 sm:$0xff] }
 0x430   :  { %v2420_v48 = vmax.f32 %v2416_v46, 0.0 }
 0x431   :  { %2425 = vst.msk [vmem:[#allocation2 + $0x30] sm:$0xff] %vm79_vm2, %v2421_v47 }
 0x432   :  { %2424 = vst.msk [vmem:[#allocation2 + $0x28] sm:$0xff] %vm79_vm2, %v2420_v48  ;;  %5453 = vmatpush3.bf16.msra.mxu1 %v5450_v39  ;;  %v4479_v48 = vld [vmem:[%s6293_s12 + $0x1] ss:$0 sm:$0xff]  ;;  %v5482_v39 = vpack.c.bf16 %v3040_v63, %v3039_v38 }
 0x433   :  { %5455 = vmatprep.subr.bf16.mxu1 %v5454_v42 }
 0x434   :  { %v2656_v17 = vld [vmem:[#allocation2 + $0x10] sm:$0xff] }
 0x435   :  { %v2457_v51 = vld [vmem:[#allocation2 + $0x7] sm:$0xff]  ;;  %v2458_v52 = vld [vmem:[#allocation2 + $0xf] sm:$0xff] }
 0x436   :  { %5070 = vmatprep.mubr.msk.f32.mxu0 %vm79_vm2, %v2457_v51  ;;  %v2453_v5 = vld [vmem:[#allocation2 + $0x6] sm:$0xff]  ;;  %v2454_v7 = vld [vmem:[#allocation2 + $0xe] sm:$0xff] }
 0x437   :  { %5071 = vmatmul.mubr.msk.f32.vlgmr.msra.gmra.mrb[8].mxu0 %vm79_vm2, %v2458_v52  ;;  %v2655_v15 = vld [vmem:[#allocation2 + $0x8] sm:$0xff]  ;;  %v2761_v27 = vld [vmem:[#allocation2 + $0x11] sm:$0xff] }
 0x438   :  { %5417 = vmatpush3.bf16.msra.mxu0 %v5414_v25  ;;  %v2658_v22 = vld [vmem:[#allocation2 + $0x30] sm:$0xff] }
 0x439   :  { %v2459_v59 = vld [vmem:[#allocation2 + $0x27] sm:$0xff]  ;;  %v2460_v61 = vld [vmem:[#allocation2 + $0x2f] sm:$0xff]  ;;  %5419 = vmatprep.subr.bf16.mxu0 %v5418_v53 }
 0x43a   :  { %5073 = vmatprep.mubr.msk.f32.mxu0 %vm79_vm2, %v2459_v59  ;;  %v2455_v10 = vld [vmem:[#allocation2 + $0x26] sm:$0xff]  ;;  %v2456_v12 = vld [vmem:[#allocation2 + $0x2e] sm:$0xff] }
 0x43b   :  { %5074 = vmatmul.mubr.msk.f32.gmra.mrb[10].mxu0 %vm79_vm2, %v2460_v61  ;;  %v2657_v20 = vld [vmem:[#allocation2 + $0x28] sm:$0xff]  ;;  %v2763_v31 = vld [vmem:[#allocation2 + $0x31] sm:$0xff] }
 0x43c   :  { %5421 = vmatpush3.bf16.msra.mxu0 %v5418_v53  ;;  %5084 = vmatprep.mubr.msk.f32.mxu0 %vm79_vm2, %v2453_v5  ;;  %v2760_v25 = vld [vmem:[#allocation2 + $0x9] sm:$0xff]  ;;  %v2866_v35 = vld [vmem:[#allocation2 + $0x12] sm:$0xff] }
 0x43d   :  { %5423 = vmatprep.subr.bf16.mxu0 %v5422_v2  ;;  %v2762_v29 = vld [vmem:[#allocation2 + $0x29] sm:$0xff]  ;;  %v2868_v0 = vld [vmem:[#allocation2 + $0x32] sm:$0xff] }
 0x43e   :  { %v2865_v33 = vld [vmem:[#allocation2 + $0xa] sm:$0xff] }
 0x43f   :  { %5085 = vmatmul.mubr.msk.f32.vlgmr.msra.gmra.mrb[8].mxu0 %vm79_vm2, %v2454_v7  ;;  %v2867_v62 = vld [vmem:[#allocation2 + $0x2a] sm:$0xff] }
 0x440   :  { %5087 = vmatprep.mubr.msk.f32.mxu0 %vm79_vm2, %v2455_v10  ;;  %5425 = vmatpush3.bf16.msra.mxu0 %v5422_v2 }
 0x441   :  { %5427 = vmatprep.subr.bf16.mxu0 %v5426_v6 }
 0x443   :  { %5088 = vmatmul.mubr.msk.f32.gmra.mrb[10].mxu0 %vm79_vm2, %v2456_v12 }
 0x444   :  { %5429 = vmatpush3.bf16.msra.mxu0 %v5426_v6  ;;  %5098 = vmatprep.mubr.msk.f32.mxu0 %vm79_vm2, %v2655_v15 }
 0x445   :  { %5431 = vmatprep.subr.bf16.mxu0 %v5430_v11 }
 0x447   :  { %5099 = vmatmul.mubr.msk.f32.vlgmr.msra.gmra.mrb[8].mxu0 %vm79_vm2, %v2656_v17  ;;  %v3030_v17 = vld [vmem:[#allocation3 + $0x198] sm:$0xff] }
 0x448   :  { %5101 = vmatprep.mubr.msk.f32.mxu0 %vm79_vm2, %v2657_v20  ;;  %5433 = vmatpush3.bf16.msra.mxu0 %v5430_v11 }
 0x449   :  { %5435 = vmatprep.subr.bf16.mxu0 %v5434_v16 }
 0x44b   :  { %5102 = vmatmul.mubr.msk.f32.gmra.mrb[10].mxu0 %vm79_vm2, %v2658_v22  ;;  %v3033_v22 = vld [vmem:[#allocation3 + $0x1a8] sm:$0xff] }
 0x44c   :  { %5437 = vmatpush3.bf16.msra.mxu0 %v5434_v16  ;;  %5112 = vmatprep.mubr.msk.f32.mxu0 %vm79_vm2, %v2760_v25  ;;  %v3029_v16 = vld [vmem:[#allocation3 + $0x190] sm:$0xff] }
 0x44d   :  { %5439 = vmatprep.subr.bf16.mxu0 %v5438_v21  ;;  %v5466_v19 = vpack.c.bf16 %v3030_v17, %v3029_v16 }
 0x44f   :  { %5113 = vmatmul.mubr.msk.f32.vlgmr.msra.gmra.mrb[8].mxu0 %vm79_vm2, %v2761_v27  ;;  %v3035_v27 = vld [vmem:[#allocation3 + $0x1b8] sm:$0xff] }
 0x450   :  { %5115 = vmatprep.mubr.msk.f32.mxu0 %vm79_vm2, %v2762_v29  ;;  %5441 = vmatpush3.bf16.msra.mxu0 %v5438_v21  ;;  %v3032_v21 = vld [vmem:[#allocation3 + $0x1a0] sm:$0xff] }
 0x451   :  { %5443 = vmatprep.subr.bf16.mxu0 %v5442_v26  ;;  %v5470_v24 = vpack.c.bf16 %v3033_v22, %v3032_v21 }
 0x453   :  { %5116 = vmatmul.mubr.msk.f32.gmra.mrb[10].mxu0 %vm79_vm2, %v2763_v31 }
 0x454   :  { %5445 = vmatpush3.bf16.msra.mxu0 %v5442_v26  ;;  %5126 = vmatprep.mubr.msk.f32.mxu0 %vm79_vm2, %v2865_v33  ;;  %v3034_v26 = vld [vmem:[#allocation3 + $0x1b0] sm:$0xff] }
 0x455   :  { %v5474_v31 = vpack.c.bf16 %v3035_v27, %v3034_v26 }
 0x457   :  { %5127 = vmatmul.mubr.msk.f32.vlgmr.msra.gmra.mrb[8].mxu0 %vm79_vm2, %v2866_v35  ;;  %v3037_v35 = vld [vmem:[#allocation3 + $0x1c0] sm:$0xff] }
 0x458   :  { %5129 = vmatprep.mubr.msk.f32.mxu0 %vm79_vm2, %v2867_v62  ;;  %v3038_v62 = vld [vmem:[#allocation3 + $0x1c8] sm:$0xff] }
 0x459   :  { %v5478_v36 = vpack.c.bf16 %v3038_v62, %v3037_v35 }
 0x45b   :  { %5130 = vmatmul.mubr.msk.f32.gmra.mrb[10].mxu0 %vm79_vm2, %v2868_v0 }
 0x52a   :  { %v5128_v44 = vpop.f32.mrb[8].mxu0 }
 0x52b   :  { %v2977_v46 = vadd.f32 %v5128_v44, %v4475_v43  ;;  %v2947_v47 = vpop.f32.mrb[9].mxu0 }
 0x52c   :  { %v2976_v49 = vadd.f32 %v4475_v43, %v2947_v47  ;;  %v3608_v47 = vld [vmem:[#allocation6 + $0x160] sm:$0xff] }
 0x52d   :  { %v2989_v50 = vmul.f32 %v4477_v45, %v2977_v46 }
 0x52e   :  { %v2988_v51 = vmul.f32 %v4477_v45, %v2976_v49  ;;  %v5131_v52 = vpop.f32.mrb[10].mxu0 }
 0x52f   :  { %v3001_v53 = vadd.f32 %v4479_v48, %v2989_v50  ;;  %v2979_v55 = vadd.f32 %v5131_v52, %v4475_v43  ;;  %v2957_v57 = vpop.f32.mrb[11].mxu0  ;;  %v3610_v50 = vld [vmem:[#allocation6 + $0x170] sm:$0xff] }
 0x530   :  { %v3000_v59 = vadd.f32 %v4479_v48, %v2988_v51  ;;  %v2978_v61 = vadd.f32 %v4475_v43, %v2957_v57  ;;  %v3611_v51 = vld [vmem:[#allocation6 + $0x178] sm:$0xff] }
 0x531   :  { %v6150_v2 = vadd.f32 %v3001_v53, %v1833_v32  ;;  %v2991_v3 = vmul.f32 %v4477_v45, %v2979_v55  ;;  %v5490_v52 = vpack.c.bf16 %v3611_v51, %v3610_v50  ;;  %v3603_v53 = vld [vmem:[#allocation6 + $0x140] sm:$0xff]  ;;  %v3604_v55 = vld [vmem:[#allocation6 + $0x148] sm:$0xff] }
 0x532   :  { %v6154_v4 = vadd.f32 %v3000_v59, %v1832_v34  ;;  %v2990_v5 = vmul.f32 %v4477_v45, %v2978_v61  ;;  %v5494_v57 = vpack.c.bf16 %v3604_v55, %v3603_v53  ;;  %v4501_v59 = vld [vmem:[%s6287_s6 + $0x2] ss:$0 sm:$0xff]  ;;  %v3625_v53 = vld [vmem:[#allocation6 + $0x1d0] sm:$0xff]  ;;  %v3626_v55 = vld [vmem:[#allocation6 + $0x1d8] sm:$0xff] }
 0x533   :  { %v3009_v6 = vmax.f32 %v6150_v2, 0.0  ;;  %v3003_v7 = vadd.f32 %v4479_v48, %v2991_v3  ;;  %v4503_v3 = vld [vmem:[%s6288_s7 + $0x2] ss:$0 sm:$0xff] }
 0x534   :  { %v3008_v8 = vmax.f32 %v6154_v4, 0.0  ;;  %v3002_v9 = vadd.f32 %v4479_v48, %v2990_v5  ;;  %v3609_v48 = vld [vmem:[#allocation6 + $0x168] sm:$0xff] }
 0x535   :  { %3013 = vst.msk [vmem:[#allocation2 + $0x10] sm:$0xff] %vm79_vm2, %v3009_v6  ;;  %v6163_v28 = vadd.f32 %v3003_v7, %v1835_v58  ;;  %v3020_v58 = vld [vmem:[#allocation3 + $0x158] sm:$0xff]  ;;  %v5486_v49 = vpack.c.bf16 %v3609_v48, %v3608_v47  ;;  %v3623_v48 = vld [vmem:[#allocation6 + $0x1c0] sm:$0xff] }
 0x536   :  { %3012 = vst.msk [vmem:[#allocation2 + $0x8] sm:$0xff] %vm79_vm2, %v3008_v8  ;;  %v6170_v30 = vadd.f32 %v3002_v9, %v1834_v60  ;;  %v5458_v12 = vpack.c.bf16 %v3020_v58, %v3019_v54  ;;  %v3028_v60 = vld [vmem:[#allocation3 + $0x188] sm:$0xff]  ;;  %v4505_v9 = vld [vmem:[%s6289_s8 + $0x2] ss:$0 sm:$0xff] }
 0x537   :  { %v3011_v32 = vmax.f32 %v6163_v28, 0.0  ;;  %v5462_v15 = vpack.c.bf16 %v3028_v60, %v3027_v56  ;;  %5487 = vmatprep.subr.bf16.mxu0 %v5486_v49 }
 0x538   :  { %v3010_v34 = vmax.f32 %v6170_v30, 0.0  ;;  %5489 = vmatpush3.bf16.msra.mxu0 %v5486_v49  ;;  %v3624_v49 = vld [vmem:[#allocation6 + $0x1c8] sm:$0xff] }
 0x539   :  { %3015 = vst.msk [vmem:[#allocation2 + $0x30] sm:$0xff] %vm79_vm2, %v3011_v32  ;;  %5491 = vmatprep.subr.bf16.mxu0 %v5490_v52  ;;  %v5518_v51 = vpack.c.bf16 %v3624_v49, %v3623_v48 }
 0x53a   :  { %3014 = vst.msk [vmem:[#allocation2 + $0x28] sm:$0xff] %vm79_vm2, %v3010_v34 }
 0x53c   :  { %v3246_v33 = vld [vmem:[#allocation2 + $0x10] sm:$0xff]  ;;  %5493 = vmatpush3.bf16.msra.mxu0 %v5490_v52 }
 0x53d   :  { %v3047_v10 = vld [vmem:[#allocation2 + $0x7] sm:$0xff]  ;;  %v3048_v11 = vld [vmem:[#allocation2 + $0xf] sm:$0xff]  ;;  %5495 = vmatprep.subr.bf16.mxu0 %v5494_v57 }
 0x53e   :  { %5140 = vmatprep.mubr.msk.f32.mxu1 %vm79_vm2, %v3047_v10  ;;  %v3043_v18 = vld [vmem:[#allocation2 + $0x6] sm:$0xff]  ;;  %v3044_v20 = vld [vmem:[#allocation2 + $0xe] sm:$0xff] }
 0x53f   :  { %5141 = vmatmul.mubr.msk.f32.vlgmr.msra.gmra.mrb[12].mxu1 %vm79_vm2, %v3048_v11  ;;  %v3245_v29 = vld [vmem:[#allocation2 + $0x8] sm:$0xff]  ;;  %v3351_v40 = vld [vmem:[#allocation2 + $0x11] sm:$0xff] }
 0x540   :  { %5457 = vmatpush3.bf16.msra.mxu1 %v5454_v42  ;;  %v3248_v37 = vld [vmem:[#allocation2 + $0x30] sm:$0xff] }
 0x541   :  { %v3049_v13 = vld [vmem:[#allocation2 + $0x27] sm:$0xff]  ;;  %v3050_v14 = vld [vmem:[#allocation2 + $0x2f] sm:$0xff]  ;;  %5459 = vmatprep.subr.bf16.mxu1 %v5458_v12 }
 0x542   :  { %5143 = vmatprep.mubr.msk.f32.mxu1 %vm79_vm2, %v3049_v13  ;;  %v3045_v23 = vld [vmem:[#allocation2 + $0x26] sm:$0xff]  ;;  %v3046_v25 = vld [vmem:[#allocation2 + $0x2e] sm:$0xff] }
 0x543   :  { %5144 = vmatmul.mubr.msk.f32.gmra.mrb[14].mxu1 %vm79_vm2, %v3050_v14  ;;  %v3247_v0 = vld [vmem:[#allocation2 + $0x28] sm:$0xff]  ;;  %v3353_v42 = vld [vmem:[#allocation2 + $0x31] sm:$0xff] }
 0x544   :  { %5461 = vmatpush3.bf16.msra.mxu1 %v5458_v12  ;;  %5154 = vmatprep.mubr.msk.f32.mxu1 %vm79_vm2, %v3043_v18  ;;  %v3350_v1 = vld [vmem:[#allocation2 + $0x9] sm:$0xff]  ;;  %v3456_v44 = vld [vmem:[#allocation2 + $0x12] sm:$0xff] }
 0x545   :  { %5463 = vmatprep.subr.bf16.mxu1 %v5462_v15  ;;  %v3352_v41 = vld [vmem:[#allocation2 + $0x29] sm:$0xff]  ;;  %v3458_v46 = vld [vmem:[#allocation2 + $0x32] sm:$0xff] }
 0x546   :  { %v3455_v43 = vld [vmem:[#allocation2 + $0xa] sm:$0xff] }
 0x547   :  { %5155 = vmatmul.mubr.msk.f32.vlgmr.msra.gmra.mrb[12].mxu1 %vm79_vm2, %v3044_v20  ;;  %v3457_v45 = vld [vmem:[#allocation2 + $0x2a] sm:$0xff] }
 0x548   :  { %5157 = vmatprep.mubr.msk.f32.mxu1 %vm79_vm2, %v3045_v23  ;;  %5465 = vmatpush3.bf16.msra.mxu1 %v5462_v15  ;;  %v3605_v23 = vld [vmem:[#allocation6 + $0x150] sm:$0xff] }
 0x549   :  { %5467 = vmatprep.subr.bf16.mxu1 %v5466_v19 }
 0x54b   :  { %5158 = vmatmul.mubr.msk.f32.gmra.mrb[14].mxu1 %vm79_vm2, %v3046_v25 }
 0x54c   :  { %5469 = vmatpush3.bf16.msra.mxu1 %v5466_v19  ;;  %5168 = vmatprep.mubr.msk.f32.mxu1 %vm79_vm2, %v3245_v29  ;;  %v3613_v29 = vld [vmem:[#allocation6 + $0x180] sm:$0xff] }
 0x54d   :  { %5471 = vmatprep.subr.bf16.mxu1 %v5470_v24 }
 0x54f   :  { %5169 = vmatmul.mubr.msk.f32.vlgmr.msra.gmra.mrb[12].mxu1 %vm79_vm2, %v3246_v33 }
 0x550   :  { %5171 = vmatprep.mubr.msk.f32.mxu1 %vm79_vm2, %v3247_v0  ;;  %5473 = vmatpush3.bf16.msra.mxu1 %v5470_v24  ;;  %v3606_v24 = vld [vmem:[#allocation6 + $0x158] sm:$0xff]  ;;  %v3615_v0 = vld [vmem:[#allocation6 + $0x190] sm:$0xff] }
 0x551   :  { %5475 = vmatprep.subr.bf16.mxu1 %v5474_v31  ;;  %v5498_v27 = vpack.c.bf16 %v3606_v24, %v3605_v23 }
 0x553   :  { %5172 = vmatmul.mubr.msk.f32.gmra.mrb[14].mxu1 %vm79_vm2, %v3248_v37 }
 0x554   :  { %5477 = vmatpush3.bf16.msra.mxu1 %v5474_v31  ;;  %5182 = vmatprep.mubr.msk.f32.mxu1 %vm79_vm2, %v3350_v1  ;;  %v3614_v31 = vld [vmem:[#allocation6 + $0x188] sm:$0xff]  ;;  %v3618_v1 = vld [vmem:[#allocation6 + $0x1a0] sm:$0xff] }
 0x555   :  { %5479 = vmatprep.subr.bf16.mxu1 %v5478_v36  ;;  %v5502_v62 = vpack.c.bf16 %v3614_v31, %v3613_v29 }
 0x557   :  { %5183 = vmatmul.mubr.msk.f32.vlgmr.msra.gmra.mrb[12].mxu1 %vm79_vm2, %v3351_v40 }
 0x558   :  { %5185 = vmatprep.mubr.msk.f32.mxu1 %vm79_vm2, %v3352_v41  ;;  %5481 = vmatpush3.bf16.msra.mxu1 %v5478_v36  ;;  %v3616_v36 = vld [vmem:[#allocation6 + $0x198] sm:$0xff] }
 0x559   :  { %5483 = vmatprep.subr.bf16.mxu1 %v5482_v39  ;;  %v5506_v38 = vpack.c.bf16 %v3616_v36, %v3615_v0 }
 0x55b   :  { %5186 = vmatmul.mubr.msk.f32.gmra.mrb[14].mxu1 %vm79_vm2, %v3353_v42 }
 0x55c   :  { %5485 = vmatpush3.bf16.msra.mxu1 %v5482_v39  ;;  %5196 = vmatprep.mubr.msk.f32.mxu1 %vm79_vm2, %v3455_v43  ;;  %v3619_v39 = vld [vmem:[#allocation6 + $0x1a8] sm:$0xff]  ;;  %v3620_v43 = vld [vmem:[#allocation6 + $0x1b0] sm:$0xff] }
 0x55d   :  { %v5510_v41 = vpack.c.bf16 %v3619_v39, %v3618_v1 }
 0x55f   :  { %5197 = vmatmul.mubr.msk.f32.vlgmr.msra.gmra.mrb[12].mxu1 %vm79_vm2, %v3456_v44  ;;  %v3621_v44 = vld [vmem:[#allocation6 + $0x1b8] sm:$0xff] }
 0x560   :  { %5199 = vmatprep.mubr.msk.f32.mxu1 %vm79_vm2, %v3457_v45 }
 0x563   :  { %5200 = vmatmul.mubr.msk.f32.gmra.mrb[14].mxu1 %vm79_vm2, %v3458_v46  ;;  %v5514_v46 = vpack.c.bf16 %v3621_v44, %v3620_v43 }
 0x632   :  { %v5198_v61 = vpop.f32.mrb[12].mxu1 }
 0x633   :  { %v3567_v5 = vadd.f32 %v5198_v61, %v4501_v59  ;;  %v3537_v7 = vpop.f32.mrb[13].mxu1 }
 0x634   :  { %v3566_v54 = vadd.f32 %v4501_v59, %v3537_v7 }
 0x635   :  { %v3579_v58 = vmul.f32 %v4503_v3, %v3567_v5 }
 0x636   :  { %v3578_v10 = vmul.f32 %v4503_v3, %v3566_v54  ;;  %v5201_v11 = vpop.f32.mrb[14].mxu1 }
 0x637   :  { %v3591_v12 = vadd.f32 %v4505_v9, %v3579_v58  ;;  %v3569_v56 = vadd.f32 %v5201_v11, %v4501_v59  ;;  %v3547_v60 = vpop.f32.mrb[15].mxu1  ;;  %v4189_v11 = vld [vmem:[%s6294_s13 + $0x8] sm:$0xff] }
 0x638   :  { %v3590_v13 = vadd.f32 %v4505_v9, %v3578_v10  ;;  %v3568_v14 = vadd.f32 %v4501_v59, %v3547_v60  ;;  %v5522_v59 = vpack.c.bf16 %v3626_v55, %v3625_v53  ;;  %v4188_v10 = vld [vmem:[%s6294_s13] sm:$0xff]  ;;  %v4191_v60 = vld [vmem:[%s6294_s13 + $0x18] sm:$0xff] }
 0x639   :  { %v3595_v15 = vmax.f32 %v3591_v12, 0.0  ;;  %v3581_v16 = vmul.f32 %v4503_v3, %v3569_v56  ;;  %v5526_v12 = vpack.c.bf16 %v4189_v11, %v4188_v10  ;;  %v4190_v56 = vld [vmem:[%s6294_s13 + $0x10] sm:$0xff] }
 0x63a   :  { %v3594_v17 = vmax.f32 %v3590_v13, 0.0  ;;  %v3580_v18 = vmul.f32 %v4503_v3, %v3568_v14  ;;  %v5530_v13 = vpack.c.bf16 %v4191_v60, %v4190_v56  ;;  %v4527_v14 = vld [vmem:[%s6291_s10 + $0x2] ss:$0 sm:$0xff] }
 0x63b   :  { %3599 = vst.msk [vmem:[#allocation2 + $0x10] sm:$0xff] %vm79_vm2, %v3595_v15  ;;  %v3593_v19 = vadd.f32 %v4505_v9, %v3581_v16  ;;  %5527 = vmatprep.subr.bf16.mxu1 %v5526_v12  ;;  %v4529_v16 = vld [vmem:[%s6292_s11 + $0x2] ss:$0 sm:$0xff] }
 0x63c   :  { %3598 = vst.msk [vmem:[#allocation2 + $0x8] sm:$0xff] %vm79_vm2, %v3594_v17  ;;  %v3592_v20 = vadd.f32 %v4505_v9, %v3580_v18  ;;  %5529 = vmatpush3.bf16.msra.mxu1 %v5526_v12 }
 0x63d   :  { %v3597_v21 = vmax.f32 %v3593_v19, 0.0  ;;  %5531 = vmatprep.subr.bf16.mxu1 %v5530_v13  ;;  %v4531_v19 = vld [vmem:[%s6293_s12 + $0x2] ss:$0 sm:$0xff]  ;;  %s5739_s12 = smov [#allocation8]  }
 0x63e   :  { %v3596_v22 = vmax.f32 %v3592_v20, 0.0  ;;  %s4337_s13 = sshll.u32 %s5739_s12, 4  ;;  %s4338_s13 = int_to_ptr.vmem [resolvable:$true] %s4337_s13 }
 0x63f   :  { %3601 = vst.msk [vmem:[#allocation2 + $0x30] sm:$0xff] %vm79_vm2, %v3597_v21  ;;  %p5711_p3 = scmp.lt.s32.totalorder %s4338_s13, %s4338_s13 }
 0x640   :  { %3600 = vst.msk [vmem:[#allocation2 + $0x28] sm:$0xff] %vm79_vm2, %v3596_v22  ;;  %5533 = vmatpush3.bf16.msra.mxu1 %v5530_v13 }
 0x642   :  { %v3832_v47 = vld [vmem:[#allocation2 + $0x10] sm:$0xff] }
 0x643   :  { %v3633_v25 = vld [vmem:[#allocation2 + $0x7] sm:$0xff]  ;;  %v3634_v26 = vld [vmem:[#allocation2 + $0xf] sm:$0xff] }
 0x644   :  { %5210 = vmatprep.mubr.msk.f32.mxu0 %vm79_vm2, %v3633_v25  ;;  %v3629_v37 = vld [vmem:[#allocation2 + $0x6] sm:$0xff]  ;;  %v3630_v63 = vld [vmem:[#allocation2 + $0xe] sm:$0xff] }
 0x645   :  { %5211 = vmatmul.mubr.msk.f32.vlgmr.msra.gmra.mrb[12].mxu0 %vm79_vm2, %v3634_v26  ;;  %v3831_v45 = vld [vmem:[#allocation2 + $0x8] sm:$0xff]  ;;  %v3937_v61 = vld [vmem:[#allocation2 + $0x11] sm:$0xff] }
 0x646   :  { %5497 = vmatpush3.bf16.msra.mxu0 %v5494_v57  ;;  %v3834_v52 = vld [vmem:[#allocation2 + $0x30] sm:$0xff] }
 0x647   :  { %v3635_v33 = vld [vmem:[#allocation2 + $0x27] sm:$0xff]  ;;  %v3636_v35 = vld [vmem:[#allocation2 + $0x2f] sm:$0xff]  ;;  %5499 = vmatprep.subr.bf16.mxu0 %v5498_v27 }
 0x648   :  { %5213 = vmatprep.mubr.msk.f32.mxu0 %vm79_vm2, %v3635_v33  ;;  %v3631_v40 = vld [vmem:[#allocation2 + $0x26] sm:$0xff]  ;;  %v3632_v42 = vld [vmem:[#allocation2 + $0x2e] sm:$0xff] }
 0x649   :  { %5214 = vmatmul.mubr.msk.f32.gmra.mrb[14].mxu0 %vm79_vm2, %v3636_v35  ;;  %v3833_v50 = vld [vmem:[#allocation2 + $0x28] sm:$0xff]  ;;  %v3939_v5 = vld [vmem:[#allocation2 + $0x31] sm:$0xff] }
 0x64a   :  { %5501 = vmatpush3.bf16.msra.mxu0 %v5498_v27  ;;  %5224 = vmatprep.mubr.msk.f32.mxu0 %vm79_vm2, %v3629_v37  ;;  %v3936_v57 = vld [vmem:[#allocation2 + $0x9] sm:$0xff]  ;;  %v4042_v9 = vld [vmem:[#allocation2 + $0x12] sm:$0xff] }
 0x64b   :  { %5503 = vmatprep.subr.bf16.mxu0 %v5502_v62  ;;  %v3938_v3 = vld [vmem:[#allocation2 + $0x29] sm:$0xff]  ;;  %v4044_v58 = vld [vmem:[#allocation2 + $0x32] sm:$0xff] }
 0x64c   :  { %v4041_v7 = vld [vmem:[#allocation2 + $0xa] sm:$0xff] }
 0x64d   :  { %5225 = vmatmul.mubr.msk.f32.vlgmr.msra.gmra.mrb[12].mxu0 %vm79_vm2, %v3630_v63  ;;  %v4043_v54 = vld [vmem:[#allocation2 + $0x2a] sm:$0xff] }
 0x64e   :  { %5227 = vmatprep.mubr.msk.f32.mxu0 %vm79_vm2, %v3631_v40  ;;  %5505 = vmatpush3.bf16.msra.mxu0 %v5502_v62 }
 0x64f   :  { %5507 = vmatprep.subr.bf16.mxu0 %v5506_v38 }
 0x651   :  { %5228 = vmatmul.mubr.msk.f32.gmra.mrb[14].mxu0 %vm79_vm2, %v3632_v42 }
 0x652   :  { %5509 = vmatpush3.bf16.msra.mxu0 %v5506_v38  ;;  %5238 = vmatprep.mubr.msk.f32.mxu0 %vm79_vm2, %v3831_v45 }
 0x653   :  { %5511 = vmatprep.subr.bf16.mxu0 %v5510_v41 }
 0x655   :  { %5239 = vmatmul.mubr.msk.f32.vlgmr.msra.gmra.mrb[12].mxu0 %vm79_vm2, %v3832_v47 }
 0x656   :  { %5241 = vmatprep.mubr.msk.f32.mxu0 %vm79_vm2, %v3833_v50  ;;  %5513 = vmatpush3.bf16.msra.mxu0 %v5510_v41 }
 0x657   :  { %5515 = vmatprep.subr.bf16.mxu0 %v5514_v46 }
 0x659   :  { %5242 = vmatmul.mubr.msk.f32.gmra.mrb[14].mxu0 %vm79_vm2, %v3834_v52 }
 0x65a   :  { %5517 = vmatpush3.bf16.msra.mxu0 %v5514_v46  ;;  %5252 = vmatprep.mubr.msk.f32.mxu0 %vm79_vm2, %v3936_v57 }
 0x65b   :  { %5519 = vmatprep.subr.bf16.mxu0 %v5518_v51 }
 0x65d   :  { %5253 = vmatmul.mubr.msk.f32.vlgmr.msra.gmra.mrb[12].mxu0 %vm79_vm2, %v3937_v61 }
 0x65e   :  { %5255 = vmatprep.mubr.msk.f32.mxu0 %vm79_vm2, %v3938_v3  ;;  %5521 = vmatpush3.bf16.msra.mxu0 %v5518_v51  ;;  %v4536_v51 = vld [vmem:[%s6295_s14] ss:$0 sm:$0xff]  ;;  %s5706_s14 = scalar_lea.vmem %s4338_s13, 32 }
 0x65f   :  { %5523 = vmatprep.subr.bf16.mxu0 %v5522_v59  ;;  %p5707_p2 = scmp.ne.s32.totalorder %s4338_s13, %s5706_s14  ;;  %p5712_p4 = scmp.lt.s32.totalorder %s5706_s14, %s5706_s14 }
 0x661   :  { %5256 = vmatmul.mubr.msk.f32.gmra.mrb[14].mxu0 %vm79_vm2, %v3939_v5  ;;  %p5713_p5 = por %p5712_p4, %p5711_p3 }
 0x662   :  { %5525 = vmatpush3.bf16.msra.mxu0 %v5522_v59  ;;  %5266 = vmatprep.mubr.msk.f32.mxu0 %vm79_vm2, %v4041_v7 }
 0x663   :  { %p5714_p6 = pnand %p5713_p5, %p5707_p2 }
 0x665   :  { %5267 = vmatmul.mubr.msk.f32.vlgmr.msra.gmra.mrb[12].mxu0 %vm79_vm2, %v4042_v9 }
 0x666   :  { %5269 = vmatprep.mubr.msk.f32.mxu0 %vm79_vm2, %v4043_v54 }
 0x669   :  { %5270 = vmatmul.mubr.msk.f32.gmra.mrb[14].mxu0 %vm79_vm2, %v4044_v58 }
 0x738   :  { %v5268_v15 = vpop.f32.mrb[12].mxu0 }
 0x739   :  { %v4153_v17 = vadd.f32 %v5268_v15, %v4527_v14  ;;  %v4123_v18 = vpop.f32.mrb[13].mxu0 }
 0x73a   :  { %v4152_v20 = vadd.f32 %v4527_v14, %v4123_v18 }
 0x73b   :  { %v4165_v21 = vmul.f32 %v4529_v16, %v4153_v17 }
 0x73c   :  { %v4164_v22 = vmul.f32 %v4529_v16, %v4152_v20  ;;  %v5271_v23 = vpop.f32.mrb[14].mxu0 }
 0x73d   :  { %v4177_v24 = vadd.f32 %v4531_v19, %v4165_v21  ;;  %v4155_v25 = vadd.f32 %v5271_v23, %v4527_v14  ;;  %v4133_v26 = vpop.f32.mrb[15].mxu0 }
 0x73e   :  { %v4176_v27 = vadd.f32 %v4531_v19, %v4164_v22  ;;  %v4154_v29 = vadd.f32 %v4527_v14, %v4133_v26 }
 0x73f   :  { %v4181_v31 = vadd.f32 %v4177_v24, %v3009_v6  ;;  %v4167_v33 = vmul.f32 %v4529_v16, %v4155_v25 }
 0x740   :  { %v4180_v35 = vadd.f32 %v4176_v27, %v3008_v8  ;;  %v4166_v62 = vmul.f32 %v4529_v16, %v4154_v29 }
 0x741   :  { %v4179_v0 = vadd.f32 %v4531_v19, %v4167_v33  ;;  %v4185_v38 = vmax.f32 %v4181_v31, 0.0 }
 0x742   :  { %v4184_v36 = vmax.f32 %v4180_v35, 0.0  ;;  %v4178_v37 = vadd.f32 %v4531_v19, %v4166_v62 }
 0x743   :  { %v4183_v63 = vadd.f32 %v4179_v0, %v3011_v32 }
 0x744   :  { %v4182_v1 = vadd.f32 %v4178_v37, %v3010_v34  ;;  %5280 = vmatprep.mubr.msk.f32.mxu1 %vm79_vm2, %v4184_v36 }
 0x745   :  { %5281 = vmatmul.mubr.msk.f32.vlgmr.msra.gmra.mrb[16].mxu1 %vm79_vm2, %v4185_v38  ;;  %v4187_v6 = vmax.f32 %v4183_v63, 0.0 }
 0x746   :  { %v4186_v2 = vmax.f32 %v4182_v1, 0.0 }
 0x748   :  { %5283 = vmatprep.mubr.msk.f32.mxu1 %vm79_vm2, %v4186_v2 }
 0x749   :  { %5284 = vmatmul.mubr.msk.f32.gmra.mrb[18].mxu1 %vm79_vm2, %v4187_v6 }
 0x818   :  { %v5282_v4 = vpop.f32.mrb[16].mxu1 }
 0x819   :  { %v4291_v8 = vsel %vm4289_vm3, %v5282_v4, 0.0  ;;  %v4270_v39 = vpop.f32.mrb[17].mxu1 }
 0x81a   :  { %v4290_v40 = vsel %vm4289_vm3, %v4270_v39, 0.0 }
 0x81b   :  { %v4292_v28 = vadd.f32 %v4291_v8, %v4290_v40 }
 0x81c   :  { %v5285_v32 = vpop.f32.mrb[18].mxu1 }
 0x81d   :  { %v4293_v41 = vrot.slane %v4292_v28, 4  ;;  %v4300_v30 = vsel %vm4289_vm3, %v5285_v32, 0.0  ;;  %v4280_v34 = vpop.f32.mrb[19].mxu1 }
 0x81e   :  { %v4299_v42 = vsel %vm4289_vm3, %v4280_v34, 0.0 }
 0x81f   :  { %v4294_v43 = vadd.f32 %v4293_v41, %v4292_v28  ;;  %v4301_v44 = vadd.f32 %v4300_v30, %v4299_v42 }
 0x821   :  { %v4295_v45 = vrot.slane %v4294_v43, 2  ;;  %v4302_v46 = vrot.slane %v4301_v44, 4 }
 0x823   :  { %v4296_v47 = vadd.f32 %v4295_v45, %v4294_v43  ;;  %v4303_v48 = vadd.f32 %v4302_v46, %v4301_v44 }
 0x825   :  { %v4297_v49 = vrot.slane %v4296_v47, 1  ;;  %v4304_v50 = vrot.slane %v4303_v48, 2 }
 0x827   :  { %v4298_v52 = vadd.f32 %v4297_v49, %v4296_v47  ;;  %v4305_v53 = vadd.f32 %v4304_v50, %v4303_v48 }
 0x829   :  { %v4315_v55 = vadd.f32 %v4536_v51, %v4298_v52  ;;  %v4306_v57 = vrot.slane %v4305_v53, 1 }
 0x82b   :  { %v4537_v59 = vmul.f32 -1.442695, %v4315_v55  ;;  %v4307_v61 = vadd.f32 %v4306_v57, %v4305_v53 }
 0x82d   :  { %5654 = vpow2.f32 %v4537_v59  ;;  %v4316_v3 = vadd.f32 %v4536_v51, %v4307_v61 }
 0x82f   :  { %v4538_v5 = vmul.f32 -1.442695, %v4316_v3 }
 0x831   :  { %5656 = vpow2.f32 %v4538_v5 }
 0x837   :  { %v5655_v7 = vpop.eup %5654 }
 0x838   :  { %v4323_v9 = vadd.f32 1.0, %v5655_v7 }
 0x83a   :  { %5658 = vrcp.f32 %v4323_v9 }
 0x83b   :  { %v5657_v54 = vpop.eup %5656 }
 0x83c   :  { %v4324_v58 = vadd.f32 1.0, %v5657_v54 }
 0x83e   :  { %5660 = vrcp.f32 %v4324_v58 }
 0x844   :  { %v5659_v10 = vpop.eup %5658 }
 0x845   :  { %4330 = vst.msk [vmem:[#allocation8] sm:$0x1] %vm4329_vm4, %v5659_v10 }
 0x848   :  { %v5661_v11 = vpop.eup %5660 }
 0x849   :  { %4331 = vst.msk [vmem:[#allocation8 + $0x1] sm:$0x1] %vm4329_vm4, %v5661_v11 }
 0x84a   :  { %5717 = shalt.err (!%p5714_p6)
}
 0x84b   :  { %s5718_s16 = scalar_lea.hbm %s6296_s15, 32 }
 0x84c   :  { %p5719_p7 = scmp.ne.s32.totalorder %s6296_s15, %s5718_s16  ;;  %p5722_p8 = scmp.lt.u32.totalorder %s5718_s16, %s6296_s15 }
 0x84e   :  { %p5724_p9 = pnand %p5722_p8, %p5719_p7 }
 0x850   :  { %5727 = shalt.err (!%p5724_p9)
}
 0x851   :  { %s5740_s20 = smov 16   ;;  %s5741_s21 = smov 1  }
 0x852   :  { %4343 = dma.vmem_to_hbm [thread:$0]  %s4338_s13, 32, %s6296_s15, [#allocation5], %s5740_s20, %s5740_s20, %s5741_s21  }
 0x853   :  { %5732 = dma.done.wait [#allocation5], 32  }
 0x854   :  { %5733 = vsyncadd [#allocation5], 4294967264 }
 0x855   :  { %4347 = vsyncpa [#allocation4], 1 }
 0x856   :  { %4348 = vsyncpa [#allocation7], 1 }
 0x857   :  { %4349 = vsyncpa [#allocation5], 1 }

</bundles_post_ra>
